<compile_context>
chip_gen: v5e
topology: v5e:2x2
jax: 0.10.0
libtpu: 0.0.40
codegen_flags: <defaults>
</compile_context>

<pallas_src>
import functools

import jax
import jax.numpy as jnp
from jax import lax
from jax.experimental import pallas as pl
from jax.experimental.pallas import tpu as pltpu


def _gat_kernel(srcw_ref, wqk_ref, p_ref, out_ref, *, mask):
    """Whole problem (<0.1 MiB) is VMEM-resident; no grid -> body runs once."""
    f32 = jnp.float32
    hi = lax.Precision.HIGHEST

    srcw = srcw_ref[...]                          # (B, N, T*D)  lane-dense (256 lanes)
    B, N, TD = srcw.shape
    T = wqk_ref.shape[1] // 2

    # --- Q/K projection: one (B*N, T*D) x (T*D, 2T) MXU push, 256-deep ------
    qk = jnp.dot(srcw.reshape(B * N, TD), wqk_ref[...],
                 precision=hi, preferred_element_type=f32)
    qk = qk.reshape(B, N, 2 * T)
    qw = qk[..., :T]                              # QW[b, q, t] = (Q @ ws2)[b, q, t]
    kt = qk[..., T:]                              # Kt[b, k, t] = K[b, t, k]

    # --- transposed scores: scoresT[b, k, q] = sum_t Kt[b,k,t] * QW[b,q,t] --
    scoresT = jnp.einsum('bkt,bqt->bkq', kt, qw,
                         precision=hi, preferred_element_type=f32)   # (B, N, N)

    biasT = p_ref[0]                              # biasT[k,q] = sum(W,0)[q] * sum(wd,0)[k]
    wsT = p_ref[1]                                # ws^T
    a = jnp.maximum(scoresT + biasT[None], 0.0)
    if mask:                                      # static python flag
        a = a * p_ref[2][None]                    # W^T
    logits = wsT[None] * a

    # --- softmax over the *batch* axis (dim=0 in the PyTorch module) --------
    mx = jnp.max(logits, axis=0, keepdims=True)
    e = jnp.exp(logits - mx)
    # exact reciprocal: approx=True misses the 1e-4 validation tolerance here.
    inv = pl.reciprocal(jnp.sum(e, axis=0, keepdims=True), approx=False)
    attT = e * inv                                # attT[b, a, n] = att[b, n, a]

    # --- fused batched update + residual; contraction on attT's LAST axis ---
    # upd[b, a, t*D+d] = sum_n att[b, n, a] * src[b, t, n, d]
    upd = jnp.einsum('ban,bnf->baf', attT, srcw,
                     precision=hi, preferred_element_type=f32)        # (B, N, T*D)
    out_ref[...] = (srcw + upd).astype(out_ref.dtype)


def _pack_params(W, ws1, ws2, ws3, wd, ws):
    """Build the two small kernel parameter buffers wrapper-side (tiny work)."""
    f32 = jnp.float32
    W = jnp.asarray(W, f32)
    ws1 = jnp.asarray(ws1, f32)
    ws2 = jnp.asarray(ws2, f32)
    ws3 = jnp.asarray(ws3, f32)
    wd = jnp.asarray(wd, f32)
    ws = jnp.asarray(ws, f32)
    T = ws1.shape[0]
    D = ws3.shape[0]
    N = W.shape[0]

    # Block-structured QK weight (ws2 folded into the Q path).
    w_q2 = (ws1[:, None, None] * ws2[None, :, :]).reshape(T * D, T)          # (T*D, T)
    w_k = (jnp.eye(T, dtype=f32)[:, None, :] * ws3[None, :, None]).reshape(T * D, T)
    Wqk = jnp.concatenate([w_q2, w_k], axis=1)                               # (T*D, 2T)

    # Transposed epilogue params: the kernel computes att^T directly, so the
    # update matmul needs no in-kernel transpose.
    sumW = jnp.sum(W, axis=0)                                                # (N,)
    wdsum = jnp.sum(wd.reshape(-1, N), axis=0)                               # (N,), multi-row safe
    biasT = wdsum[:, None] * sumW[None, :]                                   # biasT[k, q]
    P = jnp.stack([biasT, ws.T, W.T], axis=0)                                # (3, N, N)
    return Wqk, P


def _gat_wide_call(srcw, Wqk, P, mask):
    B, N, TD = srcw.shape
    vmem = pl.BlockSpec(memory_space=pltpu.MemorySpace.VMEM)
    kernel = functools.partial(_gat_kernel, mask=mask)
    return pl.pallas_call(
        kernel,
        out_shape=jax.ShapeDtypeStruct((B, N, TD), jnp.float32),
        in_specs=[vmem, vmem, vmem],
        out_specs=vmem,
    )(srcw, Wqk, P)


@functools.partial(jax.jit, static_argnames=("mask",))
def gat_layer_wide(srcw, W, ws1, ws2, ws3, wd, ws, mask=False):
    """GAT layer with activations kept in the wide (B, N, T*D) layout.

    Chain layers in this layout to amortize the (B,T,N,D)<->wide transposes.
    """
    Wqk, P = _pack_params(W, ws1, ws2, ws3, wd, ws)
    return _gat_wide_call(srcw.astype(jnp.float32), Wqk, P, mask)


@functools.partial(jax.jit, static_argnames=("mask",))
def gat_layer(src, W, ws1, ws2, ws3, wd, ws, mask=False):
    """Drop-in equivalent of GAT_layer.forward (dropout = identity)."""
    B, T, N, D = src.shape
    f32 = jnp.float32
    # Wide, lane-dense layout (B, N, T*D): layout plumbing done wrapper-side so
    # every in-kernel matmul, the residual add and the output store are
    # full-vreg (256 lanes -> unmasked vst).
    srcw = jnp.transpose(src.astype(f32), (0, 2, 1, 3)).reshape(B, N, T * D)
    Wqk, P = _pack_params(W, ws1, ws2, ws3, wd, ws)
    outw = _gat_wide_call(srcw, Wqk, P, mask)
    return jnp.transpose(outw.reshape(B, N, T, D), (0, 2, 1, 3)).astype(src.dtype)


def gat_reference(src, W, ws1, ws2, ws3, wd, ws, mask=False):
    """Pure-JAX transcription of the PyTorch forward (dropout = identity)."""
    hi = "highest"
    Q = jnp.einsum('t,btnd->bnd', ws1, src, precision=hi)
    K = jnp.einsum('btnd,d->btn', src, ws3, precision=hi)
    att = jnp.einsum('bqd,dt,btk->bqk', Q, ws2, K, precision=hi)
    att = jax.nn.relu(att + jnp.einsum('s,mw->sw', jnp.sum(W, axis=0), wd))
    if mask:
        att = att * W
    att = jax.nn.softmax(ws * att, axis=0)
    return src + jnp.einsum('btnd,bna->btad', src, att, precision=hi)


if __name__ == "__main__":
    # Small shapes consistent with the module: N nodes, T timesteps, d_model.
    B, T, N, D = 2, 8, 16, 32

    key = jax.random.PRNGKey(0)
    ks = jax.random.split(key, 7)
    src = jax.random.normal(ks[0], (B, T, N, D), jnp.float32)
    W = jax.random.uniform(ks[1], (N, N), jnp.float32)
    # Deterministic synthetic parameters (module init is zeros; use small
    # random values so the computation is non-trivial).
    ws1 = 0.1 * jax.random.normal(ks[2], (T,), jnp.float32)
    ws2 = 0.1 * jax.random.normal(ks[3], (D, T), jnp.float32)
    ws3 = 0.1 * jax.random.normal(ks[4], (D,), jnp.float32)
    wd = 0.1 * jax.random.normal(ks[5], (1, N), jnp.float32)
    ws = 0.1 * jax.random.normal(ks[6], (N, N), jnp.float32)

    for m in (False, True):
        out = jax.block_until_ready(gat_layer(src, W, ws1, ws2, ws3, wd, ws, mask=m))
        ref = gat_reference(src, W, ws1, ws2, ws3, wd, ws, mask=m)
        assert out.shape == (B, T, N, D)
        err = float(jnp.max(jnp.abs(out - ref)))
        assert jnp.allclose(out, ref, rtol=1e-4, atol=1e-4), (m, err)

    # Wide-layout entry point (layer-chaining path) must agree with the
    # standard one.
    srcw = jnp.transpose(src, (0, 2, 1, 3)).reshape(B, N, T * D)
    outw = jax.block_until_ready(gat_layer_wide(srcw, W, ws1, ws2, ws3, wd, ws, mask=False))
    out_std = gat_layer(src, W, ws1, ws2, ws3, wd, ws, mask=False)
    assert jnp.allclose(jnp.transpose(outw.reshape(B, N, T, D), (0, 2, 1, 3)),
                        out_std, rtol=1e-5, atol=1e-5)

    print("KERNEL_OK")
</pallas_src>

<mosaic_0001>
module attributes {stable_mosaic.version = 11 : i64} {
  func.func @_gat_kernel(%arg0: memref<2x16x256xf32, #tpu.memory_space<vmem>>, %arg1: memref<256x16xf32, #tpu.memory_space<vmem>>, %arg2: memref<3x16x16xf32, #tpu.memory_space<vmem>>, %arg3: memref<2x16x256xf32, #tpu.memory_space<vmem>>) attributes {dimension_semantics = [], scalar_prefetch = 0 : i64, scratch_operands = 0 : i64, tpu.core_type = #tpu.core_type<tc>} {
    %c0 = arith.constant 0 : index
    %c0_0 = arith.constant 0 : index
    %c0_1 = arith.constant 0 : index
    %0 = vector.load %arg0[%c0, %c0_0, %c0_1] : memref<2x16x256xf32, #tpu.memory_space<vmem>>, vector<2x16x256xf32>
    %1 = vector.shape_cast %0 : vector<2x16x256xf32> to vector<32x256xf32>
    %c0_2 = arith.constant 0 : index
    %c0_3 = arith.constant 0 : index
    %2 = vector.load %arg1[%c0_2, %c0_3] : memref<256x16xf32, #tpu.memory_space<vmem>>, vector<256x16xf32>
    %cst = arith.constant dense<0.000000e+00> : vector<32x16xf32>
    %3 = tpu.matmul %1, %2, %cst {dimension_numbers = #tpu.dot_dimension_numbers<[1], [0], [0], [1], [0, 0, 1, 1], [], []>, precision = #tpu.contract_precision<fp32>} : vector<32x256xf32>, vector<256x16xf32>, vector<32x16xf32> -> vector<32x16xf32>
    %4 = vector.shape_cast %3 : vector<32x16xf32> to vector<2x16x16xf32>
    %5 = vector.extract_strided_slice %4 {offsets = [0, 0, 0], sizes = [2, 16, 8], strides = [1, 1, 1]} : vector<2x16x16xf32> to vector<2x16x8xf32>
    %6 = vector.extract_strided_slice %4 {offsets = [0, 0, 8], sizes = [2, 16, 8], strides = [1, 1, 1]} : vector<2x16x16xf32> to vector<2x16x8xf32>
    "tpu.trace_start"() <{level = 10 : i32, message = "bkt,bqt->bkq"}> : () -> ()
    %cst_4 = arith.constant dense<0.000000e+00> : vector<2x16x16xf32>
    %7 = tpu.matmul %6, %5, %cst_4 {dimension_numbers = #tpu.dot_dimension_numbers<[2], [2], [1], [1], [0, 0, 0, 1, 1, 1], [0], [0]>, precision = #tpu.contract_precision<fp32>} : vector<2x16x8xf32>, vector<2x16x8xf32>, vector<2x16x16xf32> -> vector<2x16x16xf32>
    "tpu.trace_stop"() : () -> ()
    %c0_5 = arith.constant 0 : index
    %c0_6 = arith.constant 0 : index
    %c0_7 = arith.constant 0 : index
    %8 = vector.load %arg2[%c0_5, %c0_6, %c0_7] : memref<3x16x16xf32, #tpu.memory_space<vmem>>, vector<1x16x16xf32>
    %9 = vector.shape_cast %8 : vector<1x16x16xf32> to vector<16x16xf32>
    %c1 = arith.constant 1 : index
    %c0_8 = arith.constant 0 : index
    %c0_9 = arith.constant 0 : index
    %10 = vector.load %arg2[%c1, %c0_8, %c0_9] : memref<3x16x16xf32, #tpu.memory_space<vmem>>, vector<1x16x16xf32>
    %11 = vector.shape_cast %10 : vector<1x16x16xf32> to vector<16x16xf32>
    %12 = vector.shape_cast %9 : vector<16x16xf32> to vector<1x16x16xf32>
    %13 = vector.broadcast %12 : vector<1x16x16xf32> to vector<2x16x16xf32>
    %14 = arith.addf %7, %13 : vector<2x16x16xf32>
    %cst_10 = arith.constant 0.000000e+00 : f32
    %15 = vector.broadcast %cst_10 : f32 to vector<2x16x16xf32>
    %16 = arith.maximumf %14, %15 : vector<2x16x16xf32>
    %17 = vector.shape_cast %11 : vector<16x16xf32> to vector<1x16x16xf32>
    %18 = vector.broadcast %17 : vector<1x16x16xf32> to vector<2x16x16xf32>
    %19 = arith.mulf %18, %16 : vector<2x16x16xf32>
    %cst_11 = arith.constant dense<0xFF800000> : vector<16x16xf32>
    %20 = vector.multi_reduction <maximumf>, %19, %cst_11 [0] : vector<2x16x16xf32> to vector<16x16xf32>
    %21 = vector.shape_cast %20 : vector<16x16xf32> to vector<1x16x16xf32>
    %22 = vector.broadcast %21 : vector<1x16x16xf32> to vector<2x16x16xf32>
    %23 = arith.subf %19, %22 : vector<2x16x16xf32>
    %24 = math.exp %23 : vector<2x16x16xf32>
    %cst_12 = arith.constant dense<0.000000e+00> : vector<16x16xf32>
    %25 = vector.multi_reduction <add>, %24, %cst_12 [0] : vector<2x16x16xf32> to vector<16x16xf32>
    %26 = vector.shape_cast %25 : vector<16x16xf32> to vector<1x16x16xf32>
    %27 = tpu.reciprocal %26 : vector<1x16x16xf32> -> vector<1x16x16xf32>
    %28 = vector.broadcast %27 : vector<1x16x16xf32> to vector<2x16x16xf32>
    %29 = arith.mulf %24, %28 : vector<2x16x16xf32>
    "tpu.trace_start"() <{level = 10 : i32, message = "ban,bnf->baf"}> : () -> ()
    %cst_13 = arith.constant dense<0.000000e+00> : vector<2x16x256xf32>
    %30 = tpu.matmul %29, %0, %cst_13 {dimension_numbers = #tpu.dot_dimension_numbers<[2], [1], [1], [2], [0, 0, 0, 1, 1, 2], [0], [0]>, precision = #tpu.contract_precision<fp32>} : vector<2x16x16xf32>, vector<2x16x256xf32>, vector<2x16x256xf32> -> vector<2x16x256xf32>
    "tpu.trace_stop"() : () -> ()
    %31 = arith.addf %0, %30 : vector<2x16x256xf32>
    %c0_14 = arith.constant 0 : index
    %c0_15 = arith.constant 0 : index
    %c0_16 = arith.constant 0 : index
    %32 = vector.load %arg3[%c0_14, %c0_15, %c0_16] : memref<2x16x256xf32, #tpu.memory_space<vmem>>, vector<2x16x256xf32>
    tpu.vector_store %arg3[%c0_14, %c0_15, %c0_16], %31 {strides = array<i32>} : memref<2x16x256xf32, #tpu.memory_space<vmem>>, vector<2x16x256xf32>,
    return
  }
}

</mosaic_0001>

<bundles_post_ra>
// kernel: gat_layer.1
= control target key start
LH: loop header
LB: loop body
LE: loop exit
PB: predicated region body
PF: predicated region fallthrough
CT: control target
= control target key end

     0   :  { %vm933_vm0 = vcmask 64512   ;;  %s2216_s10 = smov 120   ;;  %vm1344_vm1 = vcmask 130048   ;;  %s3121_s1 = inlined_call_operand.vmem [shape: f32[256,16], index: 1, kind: input, shape index: {}]   ;;  %s3122_s0 = inlined_call_operand.vmem [shape: f32[2,16,256], index: 0, kind: input, shape index: {}]   ;;  %s3123_s2 = inlined_call_operand.vmem [shape: f32[3,16,16], index: 2, kind: input, shape index: {}]   ;;  %s3124_s3 = inlined_call_operand.vmem [shape: f32[2,16,256], index: 3, kind: output, shape index: {}]  }
   0x1   :  { %v37_v0 = vld [vmem:[%s3121_s1 + $0x78] sm:$0xff]  ;;  %v36_v1 = vld [vmem:[%s3121_s1 + $0x70] sm:$0xff]  ;;  %v35_v2 = vld [vmem:[%s3121_s1 + $0x68] sm:$0xff] }
   0x2   :  { %v2246_v3 = vand.u32 4294901760, %v37_v0  ;;  %v2248_v4 = vand.u32 4294901760, %v36_v1  ;;  %v2250_v5 = vand.u32 4294901760, %v35_v2  ;;  %v34_v6 = vld [vmem:[%s3121_s1 + $0x60] sm:$0xff]  ;;  %v33_v7 = vld [vmem:[%s3121_s1 + $0x58] sm:$0xff]  ;;  %v32_v8 = vld [vmem:[%s3121_s1 + $0x50] sm:$0xff] }
   0x3   :  { %v2261_v9 = vand.u32 4294901760, %v34_v6  ;;  %v2263_v10 = vand.u32 4294901760, %v33_v7  ;;  %v2265_v11 = vand.u32 4294901760, %v32_v8  ;;  %v31_v12 = vld [vmem:[%s3121_s1 + $0x48] sm:$0xff]  ;;  %v30_v13 = vld [vmem:[%s3121_s1 + $0x40] sm:$0xff]  ;;  %v29_v18 = vld [vmem:[%s3121_s1 + $0x38] sm:$0xff] }
   0x4   :  { %55 = vmatpush.msra.mxu0 %v2246_v3  ;;  %v2275_v14 = vsub.f32 %v37_v0, %v2246_v3  ;;  %v2278_v15 = vsub.f32 %v36_v1, %v2248_v4  ;;  %302 = vmatpush.msra.mxu3 %v2246_v3  ;;  %v2282_v16 = vsub.f32 %v35_v2, %v2250_v5  ;;  %v2284_v17 = vand.u32 4294901760, %v31_v12  ;;  %v28_v29 = vld [vmem:[%s3121_s1 + $0x30] sm:$0xff]  ;;  %v27_v36 = vld [vmem:[%s3121_s1 + $0x28] sm:$0xff]  ;;  %v26_v43 = vld [vmem:[%s3121_s1 + $0x20] sm:$0xff] }
   0x5   :  { %v2290_v19 = vsub.f32 %v34_v6, %v2261_v9  ;;  %v2293_v20 = vsub.f32 %v33_v7, %v2263_v10  ;;  %v2295_v21 = vand.u32 4294901760, %v30_v13  ;;  %v2298_v22 = vsub.f32 %v32_v8, %v2265_v11  ;;  %v25_v49 = vld [vmem:[%s3121_s1 + $0x18] sm:$0xff]  ;;  %v24_v55 = vld [vmem:[%s3121_s1 + $0x10] sm:$0xff]  ;;  %v14_v56 = vld [vmem:[%s3122_s0] sm:$0xff] }
   0x6   :  { %57 = vmatpush.msra.mxu0 %v2248_v4  ;;  %234 = vmatpush.msra.mxu2 %v2275_v14  ;;  %v3139_v23 = vand.u32 4294901760, %v2275_v14  ;;  %v3138_v24 = vand.u32 4294901760, %v2278_v15  ;;  %v3137_v25 = vand.u32 4294901760, %v2282_v16  ;;  %v2307_v27 = vand.u32 4294901760, %v29_v18  ;;  %v23_v62 = vld [vmem:[%s3121_s1 + $0x8] sm:$0xff]  ;;  %v53_v6 = vld [vmem:[%s3121_s1 + $0xf8] sm:$0xff] }
   0x7   :  { %304 = vmatpush.msra.mxu3 %v2248_v4  ;;  %v3136_v26 = vand.u32 4294901760, %v2290_v19  ;;  %v2310_v28 = vsub.f32 %v31_v12, %v2284_v17  ;;  %v3134_v33 = vand.u32 4294901760, %v2293_v20  ;;  %v3132_v34 = vand.u32 4294901760, %v2298_v22  ;;  %v22_v12 = vld [vmem:[%s3121_s1] sm:$0xff] }
   0x8   :  { %59 = vmatpush.msra.mxu0 %v2250_v5  ;;  %237 = vmatpush.msra.mxu2 %v2278_v15  ;;  %v122_v30 = vsub.f32 %v2275_v14, %v3139_v23  ;;  %v128_v31 = vsub.f32 %v2278_v15, %v3138_v24  ;;  %v134_v32 = vsub.f32 %v2282_v16, %v3137_v25  ;;  %v2340_v40 = vand.u32 4294901760, %v28_v29  ;;  %v47_v23 = vld [vmem:[%s3121_s1 + $0xc8] sm:$0xff] }
   0x9   :  { %306 = vmatpush.msra.mxu3 %v2250_v5  ;;  %v2330_v35 = vsub.f32 %v30_v13, %v2295_v21  ;;  %v140_v39 = vsub.f32 %v2290_v19, %v3136_v26  ;;  %v3131_v41 = vand.u32 4294901760, %v2310_v28  ;;  %v2345_v42 = vsub.f32 %v29_v18, %v2307_v27 }
   0xa   :  { %61 = vmatpush.msra.mxu0 %v2261_v9  ;;  %v123_v37 = vand.u32 4294901760, %v122_v30  ;;  %240 = vmatpush.msra.mxu2 %v2282_v16  ;;  %v129_v38 = vand.u32 4294901760, %v128_v31  ;;  %v135_v44 = vand.u32 4294901760, %v134_v32  ;;  %v146_v45 = vsub.f32 %v2293_v20, %v3134_v33 }
   0xb   :  { %308 = vmatpush.msra.mxu3 %v2261_v9  ;;  %v2354_v46 = vand.u32 4294901760, %v27_v36  ;;  %v152_v47 = vsub.f32 %v2298_v22, %v3132_v34  ;;  %v3129_v48 = vand.u32 4294901760, %v2330_v35  ;;  %v141_v50 = vand.u32 4294901760, %v140_v39 }
   0xc   :  { %63 = vmatpush.msra.mxu0 %v2263_v10  ;;  %124 = vmatpush.msra.mxu1 %v123_v37  ;;  %v2366_v51 = vand.u32 4294901760, %v26_v43  ;;  %v2369_v52 = vsub.f32 %v28_v29, %v2340_v40  ;;  %v158_v53 = vsub.f32 %v2310_v28, %v3131_v41  ;;  %v3128_v54 = vand.u32 4294901760, %v2345_v42 }
   0xd   :  { %243 = vmatpush.msra.mxu2 %v2290_v19  ;;  %310 = vmatpush.msra.mxu3 %v2263_v10  ;;  %v147_v57 = vand.u32 4294901760, %v146_v45  ;;  %v2384_v58 = vand.u32 4294901760, %v25_v49  ;;  %v2387_v59 = vsub.f32 %v27_v36, %v2354_v46  ;;  %v153_v60 = vand.u32 4294901760, %v152_v47  ;;  %v16_v36 = vld [vmem:[%s3122_s0 + $0x10] sm:$0xff] }
   0xe   :  { %65 = vmatpush.msra.mxu0 %v2265_v11  ;;  %130 = vmatpush.msra.mxu1 %v129_v38  ;;  %v164_v61 = vsub.f32 %v2330_v35, %v3129_v48  ;;  %v2398_v63 = vand.u32 4294901760, %v24_v55  ;;  %v3127_v0 = vand.u32 4294901760, %v2369_v52  ;;  %v2402_v1 = vsub.f32 %v26_v43, %v2366_v51 }
   0xf   :  { %246 = vmatpush.msra.mxu2 %v2293_v20  ;;  %312 = vmatpush.msra.mxu3 %v2265_v11  ;;  %v2404_v2 = vand.u32 4294901760, %v14_v56  ;;  %v159_v7 = vand.u32 4294901760, %v158_v53  ;;  %v170_v8 = vsub.f32 %v2345_v42, %v3128_v54  ;;  %v2418_v13 = vand.u32 4294901760, %v23_v62 }
  0x10   :  { %67 = vmatpush.msra.mxu0 %v2284_v17  ;;  %136 = vmatpush.msra.mxu1 %v135_v44  ;;  %v3125_v18 = vand.u32 4294901760, %v2387_v59  ;;  %v2422_v29 = vsub.f32 %v25_v49, %v2384_v58  ;;  %v165_v31 = vand.u32 4294901760, %v164_v61  ;;  %v2429_v32 = vand.u32 4294901760, %v53_v6  ;;  %v52_v44 = vld [vmem:[%s3121_s1 + $0xf0] sm:$0xff] }
  0x11   :  { %249 = vmatpush.msra.mxu2 %v2298_v22  ;;  %314 = vmatpush.msra.mxu3 %v2284_v17  ;;  %3164 = vst [vmem:[#allocation2_spill] sm:$0xff] %v2418_v13  ;;  %v2425_v30 = vsub.f32 %v14_v56, %v2404_v2  ;;  %v176_v37 = vsub.f32 %v2369_v52, %v3127_v0  ;;  %v2438_v38 = vand.u32 4294901760, %v22_v12  ;;  %v3126_v39 = vand.u32 4294901760, %v2402_v1  ;;  %v51_v56 = vld [vmem:[%s3121_s1 + $0xe8] sm:$0xff] }
  0x12   :  { %69 = vmatpush.msra.mxu0 %v2295_v21  ;;  %142 = vmatpush.msra.mxu1 %v141_v50  ;;  %v2442_v43 = vsub.f32 %v24_v55, %v2398_v63  ;;  %v171_v45 = vand.u32 4294901760, %v170_v8  ;;  %v182_v49 = vsub.f32 %v2387_v59, %v3125_v18  ;;  %v3130_v50 = vand.u32 4294901760, %v2422_v29 }
  0x13   :  { %252 = vmatpush.msra.mxu2 %v2310_v28  ;;  %316 = vmatpush.msra.mxu3 %v2295_v21  ;;  %3165 = vst [vmem:[#allocation3_spill] sm:$0xff] %v2425_v30  ;;  %v2450_v47 = vand.u32 4294901760, %v2425_v30  ;;  %v2458_v53 = vsub.f32 %v23_v62, %v2418_v13  ;;  %v2460_v55 = vand.u32 4294901760, %v16_v36  ;;  %v177_v61 = vand.u32 4294901760, %v176_v37 }
  0x14   :  { %71 = vmatpush.msra.mxu0 %v2307_v27  ;;  %148 = vmatpush.msra.mxu1 %v147_v57  ;;  %3166 = vst [vmem:[#allocation4_spill] sm:$0xff] %v2438_v38  ;;  %v2467_v57 = vand.u32 4294901760, %v52_v44  ;;  %v188_v62 = vsub.f32 %v2402_v1, %v3126_v39  ;;  %v2478_v8 = vsub.f32 %v22_v12, %v2438_v38  ;;  %v2484_v18 = vand.u32 4294901760, %v51_v56 }
  0x15   :  { %255 = vmatpush.msra.mxu2 %v2330_v35  ;;  %318 = vmatpush.msra.mxu3 %v2307_v27  ;;  %3167 = vst [vmem:[#allocation5_spill] sm:$0xff] %v2450_v47  ;;  %v183_v37 = vand.u32 4294901760, %v182_v49  ;;  %v194_v12 = vsub.f32 %v2422_v29, %v3130_v50  ;;  %v3135_v39 = vand.u32 4294901760, %v2458_v53  ;;  %v2495_v0 = vsub.f32 %v16_v36, %v2460_v55 }
  0x16   :  { %73 = vmatpush.msra.mxu0 %v2340_v40  ;;  %154 = vmatpush.msra.mxu1 %v153_v60  ;;  %v2470_v60 = vsub.f32 %v53_v6, %v2429_v32  ;;  %v89_v6 = vsub.f32 %v2425_v30, %v2450_v47  ;;  %v2501_v48 = vsub.f32 %v52_v44, %v2467_v57  ;;  %v189_v49 = vand.u32 4294901760, %v188_v62 }
  0x17   :  { %258 = vmatpush.msra.mxu2 %v2345_v42  ;;  %320 = vmatpush.msra.mxu3 %v2340_v40  ;;  %3168 = vst [vmem:[#allocation6_spill] sm:$0xff] %v2495_v0  ;;  %v3141_v50 = vand.u32 4294901760, %v2478_v8  ;;  %v2518_v34 = vsub.f32 %v51_v56, %v2484_v18  ;;  %v195_v62 = vand.u32 4294901760, %v194_v12  ;;  %v48_v56 = vld [vmem:[%s3121_s1 + $0xd0] sm:$0xff] }
  0x18   :  { %75 = vmatpush.msra.mxu0 %v2354_v46  ;;  %160 = vmatpush.msra.mxu1 %v159_v7  ;;  %v3133_v7 = vand.u32 4294901760, %v2442_v43  ;;  %v3140_v54 = vand.u32 4294901760, %v2470_v60  ;;  %3169 = vst [vmem:[#allocation7_spill] sm:$0xff] %v2501_v48  ;;  %v2514_v44 = vand.u32 4294901760, %v89_v6  ;;  %v2528_v6 = vand.u32 4294901760, %v2495_v0 }
  0x19   :  { %261 = vmatpush.msra.mxu2 %v2369_v52  ;;  %322 = vmatpush.msra.mxu3 %v2354_v46  ;;  %v212_v26 = vsub.f32 %v2478_v8, %v3141_v50 }
  0x1a   :  { %77 = vmatpush.msra.mxu0 %v2366_v51  ;;  %166 = vmatpush.msra.mxu1 %v165_v31  ;;  %v50_v31 = vld [vmem:[%s3121_s1 + $0xe0] sm:$0xff]  ;;  %v200_v36 = vsub.f32 %v2442_v43, %v3133_v7  ;;  %3171 = vst [vmem:[#allocation9_spill] sm:$0xff] %v2514_v44  ;;  %v206_v7 = vsub.f32 %v2458_v53, %v3135_v39 }
  0x1b   :  { %264 = vmatpush.msra.mxu2 %v2387_v59  ;;  %324 = vmatpush.msra.mxu3 %v2366_v51  ;;  %v2511_v41 = vand.u32 4294901760, %v50_v31  ;;  %3172 = vst [vmem:[#allocation10_spill] sm:$0xff] %v2528_v6  ;;  %v97_v50 = vsub.f32 %v2495_v0, %v2528_v6 }
  0x1c   :  { %79 = vmatpush.msra.mxu0 %v2384_v58  ;;  %172 = vmatpush.msra.mxu1 %v171_v45  ;;  %v49_v45 = vld [vmem:[%s3121_s1 + $0xd8] sm:$0xff]  ;;  %v201_v39 = vand.u32 4294901760, %v200_v36  ;;  %v2556_v36 = vand.u32 4294901760, %v48_v56 }
  0x1d   :  { %267 = vmatpush.msra.mxu2 %v2402_v1  ;;  %326 = vmatpush.msra.mxu3 %v2384_v58  ;;  %3170 = vst [vmem:[#allocation8_spill] sm:$0xff] %v2511_v41  ;;  %v2530_v33 = vand.u32 4294901760, %v49_v45  ;;  %v2546_v25 = vsub.f32 %v50_v31, %v2511_v41  ;;  %v207_v31 = vand.u32 4294901760, %v206_v7  ;;  %v213_v7 = vand.u32 4294901760, %v212_v26 }
  0x1e   :  { %81 = vmatpush.msra.mxu0 %v2398_v63  ;;  %178 = vmatpush.msra.mxu1 %v177_v61  ;;  %v18_v61 = vld [vmem:[%s3122_s0 + $0x20] sm:$0xff]  ;;  %v2593_v26 = vand.u32 4294901760, %v97_v50 }
  0x1f   :  { %270 = vmatpush.msra.mxu2 %v2422_v29  ;;  %328 = vmatpush.msra.mxu3 %v2398_v63  ;;  %v2548_v24 = vand.u32 4294901760, %v18_v61  ;;  %v2563_v12 = vsub.f32 %v49_v45, %v2530_v33  ;;  %v20_v45 = vld [vmem:[%s3122_s0 + $0x30] sm:$0xff]  ;;  %v3179_v50 = vand.u32 4294901760, %v2546_v25 }
  0x20   :  { %83 = vmatpush.msra.mxu0 %v2418_v13  ;;  %184 = vmatpush.msra.mxu1 %v183_v37  ;;  %v556_v37 = vsub.f32 %v2470_v60, %v3140_v54  ;;  %v3173_v54 = vand.u32 4294901760, %v2275_v14  ;;  %v46_v14 = vld [vmem:[%s3121_s1 + $0xc0] sm:$0xff]  ;;  %3177 = vst [vmem:[#allocation11_spill] sm:$0xff] %v2593_v26 }
  0x21   :  { %273 = vmatpush.msra.mxu2 %v2442_v43  ;;  %330 = vmatpush.msra.mxu3 %v2418_v13 }
  0x22   :  { %85 = vmatpush.msra.mxu0 %v2438_v38  ;;  %190 = vmatpush.msra.mxu1 %v189_v49  ;;  %v3174_v49 = vand.u32 4294901760, %v2501_v48 }
  0x23   :  { %91 = vmatmul.f32.vlgmr.msra.gmra.mxu0 %v2514_v44  ;;  %276 = vmatpush.msra.mxu2 %v2458_v53  ;;  %v557_v44 = vand.u32 4294901760, %v556_v37  ;;  %v3176_v37 = vand.u32 4294901760, %v2518_v34 }
  0x24   :  { %196 = vmatpush.msra.mxu1 %v195_v62  ;;  %361 = vmatpush.msrb.mxu0 %v3173_v54  ;;  %v562_v13 = vsub.f32 %v2501_v48, %v3174_v49  ;;  %v2570_v62 = vand.u32 4294901760, %v47_v23  ;;  %v3175_v54 = vand.u32 4294901760, %v2278_v15  ;;  %v2587_v48 = vsub.f32 %v48_v56, %v2556_v36  ;;  %v45_v15 = vld [vmem:[%s3121_s1 + $0xb8] sm:$0xff] }
  0x25   :  { %279 = vmatpush.msra.mxu2 %v2478_v8  ;;  %332 = vmatpush.msra.mxu3 %v2438_v38  ;;  %v2579_v38 = vsub.f32 %v18_v61, %v2548_v24  ;;  %v568_v49 = vsub.f32 %v2518_v34, %v3176_v37  ;;  %v2596_v61 = vand.u32 4294901760, %v46_v14 }
  0x26   :  { %202 = vmatpush.msra.mxu1 %v201_v39  ;;  %365 = vmatpush.msrb.mxu0 %v3175_v54  ;;  %v3178_v54 = vand.u32 4294901760, %v2282_v16  ;;  %v563_v37 = vand.u32 4294901760, %v562_v13  ;;  %v2601_v56 = vsub.f32 %v47_v23, %v2570_v62  ;;  %v2613_v16 = vand.u32 4294901760, %v45_v15  ;;  %v44_v23 = vld [vmem:[%s3121_s1 + $0xb0] sm:$0xff] }
  0x27   :  { %282 = vmatmul.f32.vlgmr.msra.gmra.mxu2 %v2425_v30  ;;  %336 = vmatmul.f32.vlgmr.msra.gmra.mxu3 %v2450_v47  ;;  %v2611_v39 = vand.u32 4294901760, %v2579_v38  ;;  %v3181_v13 = vand.u32 4294901760, %v2290_v19  ;;  %v2628_v47 = vsub.f32 %v46_v14, %v2596_v61  ;;  %v2630_v30 = vand.u32 4294901760, %v20_v45  ;;  %v43_v19 = vld [vmem:[%s3121_s1 + $0xa8] sm:$0xff] }
  0x28   :  { %489 = vmatpush.msrb.mxu2 %v2429_v32  ;;  %208 = vmatpush.msra.mxu1 %v207_v31  ;;  %v574_v31 = vsub.f32 %v2546_v25, %v3179_v50 }
  0x29   :  { %369 = vmatpush.msrb.mxu0 %v3178_v54  ;;  %558 = vmatpush.msrb.mxu3 %v557_v44  ;;  %3180 = vst [vmem:[#allocation12_spill] sm:$0xff] %v2611_v39  ;;  %v569_v44 = vand.u32 4294901760, %v568_v49  ;;  %v3182_v54 = vand.u32 4294901760, %v2563_v12 }
  0x2a   :  { %491 = vmatpush.msrb.mxu2 %v2467_v57  ;;  %214 = vmatpush.msra.mxu1 %v213_v7  ;;  %v575_v14 = vand.u32 4294901760, %v574_v31  ;;  %v2645_v7 = vsub.f32 %v45_v15, %v2613_v16  ;;  %v3152_v31 = vand.u32 4294901760, %v2628_v47 }
  0x2b   :  { %373 = vmatpush.msrb.mxu0 %v3181_v13  ;;  %216 = vmatmul.f32.vlgmr.msra.gmra.mxu1 %v2404_v2  ;;  %v580_v50 = vsub.f32 %v2563_v12, %v3182_v54  ;;  %v2637_v13 = vand.u32 4294901760, %v44_v23  ;;  %v105_v54 = vsub.f32 %v2579_v38, %v2611_v39 }
  0x2c   :  { %99 = vmatmul.f32.gmra.mxu0 %v2593_v26  ;;  %440 = vmatpush.msrb.mxu1 %v2246_v3  ;;  %v3183_v3 = vand.u32 4294901760, %v2293_v20  ;;  %v2651_v26 = vand.u32 4294901760, %v43_v19  ;;  %v3185_v20 = vand.u32 4294901760, %v2298_v22  ;;  %v41_v22 = vld [vmem:[%s3121_s1 + $0x98] sm:$0xff] }
  0x2d   :  { %493 = vmatpush.msrb.mxu2 %v2484_v18  ;;  %564 = vmatpush.msrb.mxu3 %v563_v37  ;;  %v3184_v37 = vand.u32 4294901760, %v2587_v48  ;;  %v581_v15 = vand.u32 4294901760, %v580_v50  ;;  %v3187_v50 = vand.u32 4294901760, %v2310_v28  ;;  %v598_v28 = vsub.f32 %v2628_v47, %v3152_v31 }
  0x2e   :  { %377 = vmatpush.msrb.mxu0 %v3183_v3  ;;  %442 = vmatpush.msrb.mxu1 %v2248_v4  ;;  %v42_v4 = vld [vmem:[%s3121_s1 + $0xa0] sm:$0xff]  ;;  %v3186_v3 = vand.u32 4294901760, %v2601_v56 }
  0x2f   :  { %495 = vmatpush.msrb.mxu2 %v2511_v41  ;;  %570 = vmatpush.msrb.mxu3 %v569_v44  ;;  %v586_v49 = vsub.f32 %v2587_v48, %v3184_v37  ;;  %v2661_v44 = vsub.f32 %v20_v45, %v2630_v30  ;;  %v2669_v41 = vsub.f32 %v44_v23, %v2637_v13  ;;  %v2676_v45 = vand.u32 4294901760, %v105_v54 }
  0x30   :  { %381 = vmatpush.msrb.mxu0 %v3185_v20  ;;  %287 = vmatmul.f32.gmra.mxu2 %v2495_v0  ;;  %v592_v37 = vsub.f32 %v2601_v56, %v3186_v3  ;;  %v2679_v20 = vand.u32 4294901760, %v42_v4  ;;  %v2684_v3 = vsub.f32 %v43_v19, %v2651_v26  ;;  %v2693_v54 = vand.u32 4294901760, %v41_v22 }
  0x31   :  { %444 = vmatpush.msrb.mxu1 %v2250_v5  ;;  %497 = vmatpush.msrb.mxu2 %v2530_v33  ;;  %3188 = vst [vmem:[#allocation13_spill] sm:$0xff] %v2676_v45  ;;  %v3153_v5 = vand.u32 4294901760, %v2645_v7  ;;  %v587_v23 = vand.u32 4294901760, %v586_v49  ;;  %v3190_v49 = vand.u32 4294901760, %v2330_v35  ;;  %v39_v35 = vld [vmem:[%s3121_s1 + $0x88] sm:$0xff] }
  0x32   :  { %576 = vmatpush.msrb.mxu3 %v575_v14  ;;  %385 = vmatpush.msrb.mxu0 %v3187_v50  ;;  %v2691_v14 = vand.u32 4294901760, %v2661_v44  ;;  %v593_v19 = vand.u32 4294901760, %v592_v37  ;;  %v2708_v31 = vsub.f32 %v42_v4, %v2679_v20  ;;  %v15_v37 = vld [vmem:[%s3122_s0 + $0x8] sm:$0xff] }
  0x33   :  { %342 = vmatmul.f32.gmra.mxu3 %v2528_v6  ;;  %446 = vmatpush.msrb.mxu1 %v2261_v9  ;;  %v40_v9 = vld [vmem:[%s3121_s1 + $0x90] sm:$0xff]  ;;  %v604_v50 = vsub.f32 %v2645_v7, %v3153_v5  ;;  %v599_v5 = vand.u32 4294901760, %v598_v28  ;;  %v2735_v28 = vand.u32 4294901760, %v39_v35 }
  0x34   :  { %499 = vmatpush.msrb.mxu2 %v2556_v36  ;;  %582 = vmatpush.msrb.mxu3 %v581_v15  ;;  %3189 = vst [vmem:[#allocation14_spill] sm:$0xff] %v2691_v14  ;;  %v113_v4 = vsub.f32 %v2661_v44, %v2691_v14  ;;  %v2723_v15 = vsub.f32 %v41_v22, %v2693_v54  ;;  %v3193_v22 = vand.u32 4294901760, %v2369_v52  ;;  %v2751_v52 = vand.u32 4294901760, %v15_v37 }
  0x35   :  { %389 = vmatpush.msrb.mxu0 %v3190_v49  ;;  %220 = vmatmul.f32.gmra.mxu1 %v2460_v55  ;;  %v2715_v49 = vand.u32 4294901760, %v40_v9 }
  0x36   :  { %107 = vmatmul.f32.gmra.mxu0 %v2676_v45  ;;  %448 = vmatpush.msrb.mxu1 %v2263_v10  ;;  %v3191_v10 = vand.u32 4294901760, %v2345_v42  ;;  %v621_v45 = vand.u32 4294901760, %v2708_v31 }
  0x37   :  { %501 = vmatpush.msrb.mxu2 %v2570_v62  ;;  %588 = vmatpush.msrb.mxu3 %v587_v23  ;;  %v38_v23 = vld [vmem:[%s3121_s1 + $0x80] sm:$0xff] }
  0x38   :  { %393 = vmatpush.msrb.mxu0 %v3191_v10  ;;  %450 = vmatpush.msrb.mxu1 %v2265_v11  ;;  %v3192_v11 = vand.u32 4294901760, %v2669_v41  ;;  %v605_v10 = vand.u32 4294901760, %v604_v50  ;;  %v2749_v0 = vand.u32 4294901760, %v38_v23  ;;  %v3195_v50 = vand.u32 4294901760, %v2387_v59 }
  0x39   :  { %503 = vmatpush.msrb.mxu2 %v2596_v61  ;;  %594 = vmatpush.msrb.mxu3 %v593_v19  ;;  %v3194_v19 = vand.u32 4294901760, %v2684_v3  ;;  %v622_v59 = vsub.f32 %v2708_v31, %v621_v45 }
  0x3a   :  { %v610_v42 = vsub.f32 %v2669_v41, %v3192_v11  ;;  %397 = vmatpush.msrb.mxu0 %v3193_v22  ;;  %292 = vmatmul.f32.gmra.mxu2 %v2579_v38  ;;  %v2747_v11 = vsub.f32 %v40_v9, %v2715_v49  ;;  %v2755_v22 = vand.u32 4294901760, %v113_v4  ;;  %v2761_v9 = vsub.f32 %v39_v35, %v2735_v28 }
  0x3b   :  { %452 = vmatpush.msrb.mxu1 %v2284_v17  ;;  %505 = vmatpush.msrb.mxu2 %v2613_v16  ;;  %v616_v6 = vsub.f32 %v2684_v3, %v3194_v19  ;;  %v627_v17 = vand.u32 4294901760, %v2723_v15  ;;  %v2775_v35 = vsub.f32 %v38_v23, %v2749_v0  ;;  %v3197_v23 = vand.u32 4294901760, %v2422_v29 }
  0x3c   :  { %600 = vmatpush.msrb.mxu3 %v599_v5  ;;  %401 = vmatpush.msrb.mxu0 %v3195_v50  ;;  %v611_v19 = vand.u32 4294901760, %v610_v42  ;;  %v3196_v5 = vand.u32 4294901760, %v2402_v1  ;;  %v633_v50 = vand.u32 4294901760, %v2747_v11  ;;  %v623_v42 = vand.u32 4294901760, %v622_v59 }
  0x3d   :  { %348 = vmatmul.f32.gmra.mxu3 %v2611_v39  ;;  %454 = vmatpush.msrb.mxu1 %v2295_v21  ;;  %v617_v4 = vand.u32 4294901760, %v616_v6  ;;  %v2772_v21 = vsub.f32 %v15_v37, %v2751_v52  ;;  %v628_v1 = vsub.f32 %v2723_v15, %v627_v17  ;;  %v639_v6 = vand.u32 4294901760, %v2761_v9  ;;  %v17_v37 = vld [vmem:[%s3122_s0 + $0x18] sm:$0xff] }
  0x3e   :  { %507 = vmatpush.msrb.mxu2 %v2637_v13  ;;  %606 = vmatpush.msrb.mxu3 %v605_v10 }
  0x3f   :  { %405 = vmatpush.msrb.mxu0 %v3196_v5  ;;  %224 = vmatmul.f32.gmra.mxu1 %v2548_v24  ;;  %v2795_v10 = vand.u32 4294901760, %v2772_v21  ;;  %v3198_v5 = vand.u32 4294901760, %v2442_v43  ;;  %v629_v29 = vand.u32 4294901760, %v628_v1  ;;  %v640_v59 = vsub.f32 %v2761_v9, %v639_v6 }
  0x40   :  { %115 = vmatmul.f32.gmra.mxu0 %v2755_v22  ;;  %456 = vmatpush.msrb.mxu1 %v2307_v27  ;;  %v634_v27 = vsub.f32 %v2747_v11, %v633_v50 }
  0x41   :  { %509 = vmatpush.msrb.mxu2 %v2651_v26  ;;  %612 = vmatpush.msrb.mxu3 %v611_v19  ;;  %v645_v19 = vand.u32 4294901760, %v2775_v35  ;;  %v523_v1 = vsub.f32 %v2772_v21, %v2795_v10 }
  0x42   :  { %409 = vmatpush.msrb.mxu0 %v3197_v23  ;;  %458 = vmatpush.msrb.mxu1 %v2340_v40  ;;  %v2801_v40 = vand.u32 4294901760, %v17_v37  ;;  %v635_v43 = vand.u32 4294901760, %v634_v27 }
  0x43   :  { %511 = vmatpush.msrb.mxu2 %v2679_v20  ;;  %618 = vmatpush.msrb.mxu3 %v617_v4  ;;  %v3199_v4 = vand.u32 4294901760, %v2458_v53  ;;  %v3200_v53 = vand.u32 4294901760, %v2478_v8 }
  0x44   :  { %413 = vmatpush.msrb.mxu0 %v3198_v5  ;;  %297 = vmatmul.f32.gmra.mxu2 %v2661_v44  ;;  %v2819_v23 = vsub.f32 %v17_v37, %v2801_v40  ;;  %v19_v37 = vld [vmem:[%s3122_s0 + $0x28] sm:$0xff]  ;;  %v3202_v5 = vld [vmem:[#allocation2_spill] sm:$0xff] }
  0x45   :  { %460 = vmatpush.msrb.mxu1 %v2354_v46  ;;  %513 = vmatpush.msrb.mxu2 %v2693_v54  ;;  %v646_v46 = vsub.f32 %v2775_v35, %v645_v19 }
  0x46   :  { %624 = vmatpush.msrb.mxu3 %v623_v42  ;;  %417 = vmatpush.msrb.mxu0 %v3199_v4  ;;  %v2827_v42 = vand.u32 4294901760, %v523_v1  ;;  %v2835_v8 = vand.u32 4294901760, %v2819_v23  ;;  %v3204_v4 = vld [vmem:[#allocation4_spill] sm:$0xff] }
  0x47   :  { %354 = vmatmul.f32.gmra.mxu3 %v2691_v14  ;;  %462 = vmatpush.msrb.mxu1 %v2366_v51  ;;  %v641_v51 = vand.u32 4294901760, %v640_v59  ;;  %v647_v27 = vand.u32 4294901760, %v646_v46  ;;  %v3203_v59 = vand.u32 4294901760, %v2470_v60  ;;  %v3207_v46 = vand.u32 4294901760, %v2518_v34 }
  0x48   :  { %515 = vmatpush.msrb.mxu2 %v2715_v49  ;;  %630 = vmatpush.msrb.mxu3 %v629_v29  ;;  %v2840_v29 = vand.u32 4294901760, %v19_v37 }
  0x49   :  { %421 = vmatpush.msrb.mxu0 %v3200_v53  ;;  %228 = vmatmul.f32.gmra.mxu1 %v2630_v30  ;;  %v21_v53 = vld [vmem:[%s3122_s0 + $0x38] sm:$0xff] }
  0x4a   :  { %423 = vmatmul.f32.vlgmr.msrb.gmra.mxu0 %v2404_v2  ;;  %464 = vmatpush.msrb.mxu1 %v2384_v58  ;;  %v3201_v58 = vld [vmem:[#allocation7_spill] sm:$0xff]  ;;  %v2854_v1 = vsub.f32 %v19_v37, %v2840_v29  ;;  %v3212_v37 = vand.u32 4294901760, %v2587_v48 }
  0x4b   :  { %517 = vmatpush.msrb.mxu2 %v2735_v28  ;;  %636 = vmatpush.msrb.mxu3 %v635_v43  ;;  %v3205_v43 = vand.u32 4294901760, %v3201_v58 }
  0x4c   :  { %668 = vmatpush.msra.mxu0 %v2470_v60  ;;  %466 = vmatpush.msrb.mxu1 %v2398_v63  ;;  %v531_v63 = vsub.f32 %v2819_v23, %v2835_v8  ;;  %3206 = vst [vmem:[#allocation7_spill] sm:$0xff] %v2854_v1 }
  0x4d   :  { %519 = vmatpush.msrb.mxu2 %v2749_v0  ;;  %642 = vmatpush.msrb.mxu3 %v641_v51  ;;  %v2871_v51 = vand.u32 4294901760, %v2854_v1 }
  0x4e   :  { %671 = vmatpush.msra.mxu0 %v3201_v58  ;;  %468 = vmatpush.msrb.mxu1 %v3202_v5  ;;  %v2860_v60 = vand.u32 4294901760, %v531_v63  ;;  %v3215_v58 = vand.u32 4294901760, %v2601_v56  ;;  %v3217_v5 = vand.u32 4294901760, %v2628_v47 }
  0x4f   :  { %525 = vmatmul.f32.vlgmr.msrb.gmra.mxu2 %v2827_v42  ;;  %648 = vmatpush.msrb.mxu3 %v647_v27  ;;  %3208 = vst [vmem:[#allocation2_spill] sm:$0xff] %v2871_v51  ;;  %v3210_v27 = vand.u32 4294901760, %v2563_v12 }
  0x50   :  { %795 = vmatpush.msra.mxu2 %v3203_v59  ;;  %674 = vmatpush.msra.mxu0 %v2518_v34  ;;  %v2878_v34 = vand.u32 4294901760, %v21_v53 }
  0x51   :  { %470 = vmatpush.msrb.mxu1 %v3204_v4  ;;  %650 = vmatmul.f32.vlgmr.msrb.gmra.mxu3 %v2751_v52 }
  0x52   :  { %799 = vmatpush.msra.mxu2 %v3205_v43  ;;  %874 = vmatpush.msra.mxu3 %v2429_v32 }
  0x53   :  { %677 = vmatpush.msra.mxu0 %v2546_v25  ;;  %472 = vmatmul.f32.vlgmr.msrb.gmra.mxu1 %v2404_v2 }
  0x54   :  { %427 = vmatmul.f32.gmra.mxu0 %v2460_v55  ;;  %736 = vmatpush.msra.mxu1 %v2429_v32  ;;  %v3209_v32 = vand.u32 4294901760, %v2546_v25  ;;  %v539_v25 = vsub.f32 %v2854_v1, %v2871_v51 }
  0x55   :  { %803 = vmatpush.msra.mxu2 %v3207_v46  ;;  %876 = vmatpush.msra.mxu3 %v2467_v57 }
  0x56   :  { %680 = vmatpush.msra.mxu0 %v2563_v12  ;;  %738 = vmatpush.msra.mxu1 %v2467_v57  ;;  %v3211_v57 = vld [vmem:[#allocation8_spill] sm:$0xff]  ;;  %v2899_v12 = vand.u32 4294901760, %v539_v25 }
  0x57   :  { %807 = vmatpush.msra.mxu2 %v3209_v32  ;;  %878 = vmatpush.msra.mxu3 %v2484_v18 }
  0x58   :  { %683 = vmatpush.msra.mxu0 %v2587_v48  ;;  %533 = vmatmul.f32.gmra.mxu2 %v2860_v60  ;;  %3214 = vst [vmem:[#allocation8_spill] sm:$0xff] %v2899_v12 }
  0x59   :  { %740 = vmatpush.msra.mxu1 %v2484_v18  ;;  %811 = vmatpush.msra.mxu2 %v3210_v27  ;;  %v2893_v18 = vsub.f32 %v21_v53, %v2878_v34 }
  0x5a   :  { %880 = vmatpush.msra.mxu3 %v3211_v57  ;;  %686 = vmatpush.msra.mxu0 %v2601_v56  ;;  %v3220_v56 = vand.u32 4294901760, %v2684_v3 }
  0x5b   :  { %654 = vmatmul.f32.gmra.mxu3 %v2801_v40  ;;  %742 = vmatpush.msra.mxu1 %v3211_v57  ;;  %3213 = vst [vmem:[#allocation4_spill] sm:$0xff] %v2893_v18  ;;  %v2907_v48 = vand.u32 4294901760, %v2893_v18 }
  0x5c   :  { %815 = vmatpush.msra.mxu2 %v3212_v37  ;;  %882 = vmatpush.msra.mxu3 %v2530_v33 }
  0x5d   :  { %689 = vmatpush.msra.mxu0 %v2628_v47  ;;  %476 = vmatmul.f32.gmra.mxu1 %v2460_v55  ;;  %3216 = vst [vmem:[#allocation15_spill] sm:$0xff] %v2907_v48  ;;  %v3219_v47 = vand.u32 4294901760, %v2669_v41 }
  0x5e   :  { %431 = vmatmul.f32.gmra.mxu0 %v2548_v24  ;;  %744 = vmatpush.msra.mxu1 %v2530_v33  ;;  %v3218_v33 = vand.u32 4294901760, %v2645_v7 }
  0x5f   :  { %819 = vmatpush.msra.mxu2 %v3215_v58  ;;  %884 = vmatpush.msra.mxu3 %v2556_v36 }
  0x60   :  { %692 = vmatpush.msra.mxu0 %v2645_v7  ;;  %746 = vmatpush.msra.mxu1 %v2556_v36  ;;  %v547_v36 = vsub.f32 %v2893_v18, %v2907_v48 }
  0x61   :  { %823 = vmatpush.msra.mxu2 %v3217_v5  ;;  %886 = vmatpush.msra.mxu3 %v2570_v62 }
  0x62   :  { %695 = vmatpush.msra.mxu0 %v2669_v41  ;;  %541 = vmatmul.f32.gmra.mxu2 %v2899_v12 }
  0x63   :  { %748 = vmatpush.msra.mxu1 %v2570_v62  ;;  %827 = vmatpush.msra.mxu2 %v3218_v33  ;;  %v2930_v62 = vand.u32 4294901760, %v547_v36 }
  0x64   :  { %888 = vmatpush.msra.mxu3 %v2596_v61  ;;  %698 = vmatpush.msra.mxu0 %v2684_v3 }
  0x65   :  { %658 = vmatmul.f32.gmra.mxu3 %v2840_v29  ;;  %750 = vmatpush.msra.mxu1 %v2596_v61 }
  0x66   :  { %831 = vmatpush.msra.mxu2 %v3219_v47  ;;  %890 = vmatpush.msra.mxu3 %v2613_v16 }
  0x67   :  { %701 = vmatpush.msra.mxu0 %v2708_v31  ;;  %480 = vmatmul.f32.gmra.mxu1 %v2548_v24 }
  0x68   :  { %435 = vmatmul.f32.gmra.mxu0 %v2630_v30  ;;  %752 = vmatpush.msra.mxu1 %v2613_v16 }
  0x69   :  { %835 = vmatpush.msra.mxu2 %v3220_v56  ;;  %892 = vmatpush.msra.mxu3 %v2637_v13 }
  0x6a   :  { %704 = vmatpush.msra.mxu0 %v2723_v15  ;;  %754 = vmatpush.msra.mxu1 %v2637_v13 }
  0x6b   :  { %839 = vmatpush.msra.mxu2 %v621_v45  ;;  %894 = vmatpush.msra.mxu3 %v2651_v26 }
  0x6c   :  { %707 = vmatpush.msra.mxu0 %v2747_v11  ;;  %549 = vmatmul.f32.gmra.mxu2 %v2930_v62 }
  0x6d   :  { %756 = vmatpush.msra.mxu1 %v2651_v26  ;;  %843 = vmatpush.msra.mxu2 %v627_v17 }
  0x6e   :  { %896 = vmatpush.msra.mxu3 %v2679_v20  ;;  %710 = vmatpush.msra.mxu0 %v2761_v9 }
  0x6f   :  { %662 = vmatmul.f32.gmra.mxu3 %v2878_v34  ;;  %758 = vmatpush.msra.mxu1 %v2679_v20 }
  0x70   :  { %847 = vmatpush.msra.mxu2 %v633_v50  ;;  %898 = vmatpush.msra.mxu3 %v2693_v54 }
  0x71   :  { %713 = vmatpush.msra.mxu0 %v2775_v35  ;;  %484 = vmatmul.f32.gmra.mxu1 %v2630_v30 }
  0x72   :  { %716 = vmatmul.f32.vlgmr.msra.gmra.mxu0 %v2772_v21  ;;  %760 = vmatpush.msra.mxu1 %v2693_v54 }
  0x73   :  { %851 = vmatpush.msra.mxu2 %v639_v6  ;;  %900 = vmatpush.msra.mxu3 %v2715_v49 }
  0x74   :  { %762 = vmatpush.msra.mxu1 %v2715_v49 }
  0x75   :  { %855 = vmatpush.msra.mxu2 %v645_v19  ;;  %902 = vmatpush.msra.mxu3 %v2735_v28 }
  0x76   :  { %764 = vmatpush.msra.mxu1 %v2735_v28  ;;  %857 = vmatmul.f32.vlgmr.msra.gmra.mxu2 %v2751_v52 }
  0x77   :  { %904 = vmatpush.msra.mxu3 %v2749_v0 }
  0x78   :  { %766 = vmatpush.msra.mxu1 %v2749_v0  ;;  %906 = vmatmul.f32.vlgmr.msra.gmra.mxu3 %v2751_v52 }
  0x79   :  { %770 = vmatmul.f32.vlgmr.msra.gmra.mxu1 %v2795_v10 }
  0x7a   :  { %721 = vmatmul.f32.gmra.mxu0 %v2819_v23 }
  0x7e   :  { %861 = vmatmul.f32.gmra.mxu2 %v2801_v40 }
  0x80   :  { %910 = vmatmul.f32.gmra.mxu3 %v2801_v40 }
  0x81   :  { %776 = vmatmul.f32.gmra.mxu1 %v2835_v8 }
  0x82   :  { %726 = vmatmul.f32.gmra.mxu0 %v2854_v1 }
  0x86   :  { %865 = vmatmul.f32.gmra.mxu2 %v2840_v29 }
  0x88   :  { %914 = vmatmul.f32.gmra.mxu3 %v2840_v29 }
  0x89   :  { %782 = vmatmul.f32.gmra.mxu1 %v2871_v51 }
  0x8a   :  { %731 = vmatmul.f32.gmra.mxu0 %v2893_v18 }
  0x8e   :  { %869 = vmatmul.f32.gmra.mxu2 %v2878_v34 }
  0x90   :  { %918 = vmatmul.f32.gmra.mxu3 %v2878_v34 }
  0x91   :  { %788 = vmatmul.f32.gmra.mxu1 %v2907_v48 }
  0xa0   :  { %v92_v41 = vpop.f32.mrf.mxu0 }
  0xa8   :  { %v217_v0 = vpop.f32.mrf.mxu1 }
  0xa9   :  { %v100_v26 = vpop.f32.mrf.mxu0  ;;  %v218_v43 = vadd.f32 %v217_v0, %v92_v41 }
  0xaa   :  { %v283_v61 = vpop.f32.mrf.mxu2  ;;  %v337_v16 = vpop.f32.mrf.mxu3 }
  0xab   :  { %v284_v46 = vadd.f32 %v283_v61, %v218_v43 }
  0xad   :  { %v338_v57 = vadd.f32 %v337_v16, %v284_v46 }
  0xb2   :  { %v221_v7 = vpop.f32.mrf.mxu1 }
  0xb3   :  { %v108_v13 = vpop.f32.mrf.mxu0  ;;  %v288_v31 = vpop.f32.mrf.mxu2  ;;  %v222_v25 = vadd.f32 %v221_v7, %v100_v26 }
  0xb5   :  { %v289_v5 = vadd.f32 %v288_v31, %v222_v25 }
  0xb6   :  { %v343_v45 = vpop.f32.mrf.mxu3 }
  0xb7   :  { %v344_v47 = vadd.f32 %v343_v45, %v289_v5 }
  0xbc   :  { %v225_v20 = vpop.f32.mrf.mxu1 }
  0xbd   :  { %v116_v3 = vpop.f32.mrf.mxu0  ;;  %v293_v54 = vpop.f32.mrf.mxu2  ;;  %v226_v56 = vadd.f32 %v225_v20, %v108_v13 }
  0xbf   :  { %v294_v14 = vadd.f32 %v293_v54, %v226_v56 }
  0xc0   :  { %v349_v15 = vpop.f32.mrf.mxu3 }
  0xc1   :  { %v350_v12 = vadd.f32 %v349_v15, %v294_v14 }
  0xc6   :  { %v229_v49 = vpop.f32.mrf.mxu1 }
  0xc7   :  { %v424_v28 = vpop.f32.mrf.mxu0  ;;  %v298_v11 = vpop.f32.mrf.mxu2  ;;  %v230_v16 = vadd.f32 %v229_v49, %v116_v3 }
  0xc8   :  { %v425_v58 = vadd.f32 %v424_v28, %v338_v57 }
  0xc9   :  { %v299_v45 = vadd.f32 %v298_v11, %v230_v16 }
  0xca   :  { %v355_v17 = vpop.f32.mrf.mxu3 }
  0xd0   :  { %v473_v9 = vpop.f32.mrf.mxu1 }
  0xd1   :  { %v428_v50 = vpop.f32.mrf.mxu0  ;;  %v474_v33 = vadd.f32 %v473_v9, %v425_v58 }
  0xd2   :  { %v526_v35 = vpop.f32.mrf.mxu2  ;;  %v429_v48 = vadd.f32 %v428_v50, %v344_v47 }
  0xd3   :  { %v527_v1 = vadd.f32 %v526_v35, %v474_v33 }
  0xd4   :  { %v651_v6 = vpop.f32.mrf.mxu3 }
  0xd5   :  { %v652_v41 = vadd.f32 %v651_v6, %v527_v1 }
  0xda   :  { %v477_v19 = vpop.f32.mrf.mxu1 }
  0xdb   :  { %v432_v59 = vpop.f32.mrf.mxu0  ;;  %v534_v63 = vpop.f32.mrf.mxu2  ;;  %v478_v0 = vadd.f32 %v477_v19, %v429_v48 }
  0xdc   :  { %v433_v31 = vadd.f32 %v432_v59, %v350_v12 }
  0xdd   :  { %v535_v26 = vadd.f32 %v534_v63, %v478_v0 }
  0xde   :  { %v655_v4 = vpop.f32.mrf.mxu3 }
  0xdf   :  { %v656_v13 = vadd.f32 %v655_v4, %v535_v26 }
  0xe4   :  { %v481_v53 = vpop.f32.mrf.mxu1 }
  0xe5   :  { %v436_v32 = vpop.f32.mrf.mxu0  ;;  %v542_v27 = vpop.f32.mrf.mxu2  ;;  %v482_v20 = vadd.f32 %v481_v53, %v433_v31 }
  0xe7   :  { %v543_v14 = vadd.f32 %v542_v27, %v482_v20 }
  0xe8   :  { %v659_v37 = vpop.f32.mrf.mxu3 }
  0xe9   :  { %v660_v11 = vadd.f32 %v659_v37, %v543_v14 }
  0xee   :  { %v485_v36 = vpop.f32.mrf.mxu1 }
  0xef   :  { %v717_v18 = vpop.f32.mrf.mxu0  ;;  %v550_v51 = vpop.f32.mrf.mxu2 }
  0xf0   :  { %v718_v61 = vadd.f32 %v717_v18, %v652_v41  ;;  %v356_v18 = vadd.f32 %v355_v17, %v299_v45 }
  0xf2   :  { %v663_v39 = vpop.f32.mrf.mxu3  ;;  %v437_v12 = vadd.f32 %v436_v32, %v356_v18 }
  0xf4   :  { %v486_v6 = vadd.f32 %v485_v36, %v437_v12 }
  0xf6   :  { %v771_v43 = vpop.f32.mrf.mxu1  ;;  %v551_v17 = vadd.f32 %v550_v51, %v486_v6 }
  0xf7   :  { %v722_v7 = vpop.f32.mrf.mxu0  ;;  %v772_v28 = vadd.f32 %v771_v43, %v718_v61 }
  0xf8   :  { %v723_v50 = vadd.f32 %v722_v7, %v656_v13  ;;  %v664_v36 = vadd.f32 %v663_v39, %v551_v17 }
  0xf9   :  { %v858_v9 = vpop.f32.mrf.mxu2 }
  0xfa   :  { %v859_v46 = vadd.f32 %v858_v9, %v772_v28 }
  0xfb   :  { %v907_v35 = vpop.f32.mrf.mxu3 }
  0xfc   :  { %v908_v57 = vadd.f32 %v907_v35, %v859_v46 }
  0xfe   :  { %929 = vrot.lane.b32.xlu0 %v908_v57, %s2216_s10  ;;  %v777_v1 = vpop.f32.mrf.mxu1  ;;  %v938_v3 = vsel %vm933_vm0, %v908_v57, 0 }
  0xff   :  { %v778_v48 = vadd.f32 %v777_v1, %v723_v50  ;;  %v727_v54 = vpop.f32.mrf.mxu0  ;;  %v958_v19 = vand.u32 4294901760, %v938_v3 }
 0x100   :  { %v728_v4 = vadd.f32 %v727_v54, %v660_v11 }
 0x101   :  { %v862_v15 = vpop.f32.mrf.mxu2  ;;  %v998_v27 = vsub.f32 %v938_v3, %v958_v19 }
 0x102   :  { %v863_v49 = vadd.f32 %v862_v15, %v778_v48 }
 0x103   :  { %v911_v59 = vpop.f32.mrf.mxu3  ;;  %v999_v0 = vand.u32 4294901760, %v998_v27 }
 0x104   :  { %v912_v63 = vadd.f32 %v911_v59, %v863_v49 }
 0x105   :  { %v1000_v28 = vsub.f32 %v998_v27, %v999_v0 }
 0x106   :  { %v940_v53 = vsel %vm933_vm0, %v912_v63, 0  ;;  %931 = vrot.lane.b32.xlu0 %v912_v63, %s2216_s10  ;;  %v783_v25 = vpop.f32.mrf.mxu1 }
 0x107   :  { %v956_v58 = vand.u32 4294901760, %v940_v53  ;;  %v784_v5 = vadd.f32 %v783_v25, %v728_v4  ;;  %v732_v32 = vpop.f32.mrf.mxu0  ;;  %v1001_v13 = vand.u32 4294901760, %v1000_v28  ;;  %v3223_v28 = vld [vmem:[#allocation6_spill] sm:$0xff] }
 0x108   :  { %v733_v43 = vadd.f32 %v732_v32, %v664_v36  ;;  %v3221_v36 = vld [vmem:[#allocation11_spill] sm:$0xff] }
 0x109   :  { %v992_v33 = vsub.f32 %v940_v53, %v956_v58  ;;  %v866_v47 = vpop.f32.mrf.mxu2  ;;  %957 = vmatpush.xpose.msrb.mxu0 %v956_v58  ;;  %1058 = vmatpush.xpose.msrb.mxu3 %v956_v58 }
 0x10a   :  { %v867_v37 = vadd.f32 %v866_v47, %v784_v5 }
 0x10b   :  { %v915_v56 = vpop.f32.mrf.mxu3  ;;  %1028 = vmatpush.xpose.msrb.mxu2 %v992_v33  ;;  %v993_v41 = vand.u32 4294901760, %v992_v33 }
 0x10c   :  { %v916_v61 = vadd.f32 %v915_v56, %v867_v37 }
 0x10d   :  { %959 = vmatpush.xpose.msrb.mxu0 %v958_v19  ;;  %1060 = vmatpush.xpose.msrb.mxu3 %v958_v19  ;;  %v994_v16 = vsub.f32 %v992_v33, %v993_v41 }
 0x10e   :  { %1134 = vrot.lane.b32.xlu1 %v916_v61, %s2216_s10  ;;  %v789_v51 = vpop.f32.mrf.mxu1  ;;  %v1142_v31 = vsel %vm933_vm0, %v916_v61, 0 }
 0x10f   :  { %v790_v26 = vadd.f32 %v789_v51, %v733_v43  ;;  %1031 = vmatpush.xpose.msrb.mxu2 %v998_v27  ;;  %v995_v7 = vand.u32 4294901760, %v994_v16  ;;  %v1162_v46 = vand.u32 4294901760, %v1142_v31 }
 0x111   :  { %1091 = vmatpush.xpose.msra.mxu0 %v993_v41  ;;  %v870_v39 = vpop.f32.mrf.mxu2  ;;  %996 = vmatpush.xpose.msrb.mxu1 %v995_v7  ;;  %v1202_v57 = vsub.f32 %v1142_v31, %v1162_v46  ;;  %v3222_v41 = vld [vmem:[#allocation9_spill] sm:$0xff] }
 0x112   :  { %v871_v9 = vadd.f32 %v870_v39, %v790_v26  ;;  %v3224_v39 = vld [vmem:[#allocation3_spill] sm:$0xff] }
 0x113   :  { %v919_v45 = vpop.f32.mrf.mxu3  ;;  %v1203_v14 = vand.u32 4294901760, %v1202_v57 }
 0x114   :  { %v920_v20 = vadd.f32 %v919_v45, %v871_v9  ;;  %v3226_v45 = vld [vmem:[#allocation5_spill] sm:$0xff] }
 0x115   :  { %1095 = vmatpush.xpose.msra.mxu0 %v999_v0  ;;  %1002 = vmatpush.xpose.msrb.mxu1 %v1001_v13  ;;  %v1204_v54 = vsub.f32 %v1202_v57, %v1203_v14 }
 0x116   :  { %v1144_v35 = vsel %vm933_vm0, %v920_v20, 0  ;;  %1136 = vrot.lane.b32.xlu1 %v920_v20, %s2216_s10 }
 0x117   :  { %v1160_v50 = vand.u32 4294901760, %v1144_v35  ;;  %v1205_v12 = vand.u32 4294901760, %v1204_v54  ;;  %v923_v54 = vld [vmem:[%s3123_s2 + $0x8] sm:$0xff] }
 0x119   :  { %1120 = vmatpush.xpose.msra.mxu1 %v956_v58  ;;  %v1196_v1 = vsub.f32 %v1144_v35, %v1160_v50  ;;  %1161 = vmatpush.xpose.msra.mxu2 %v1160_v50 }
 0x11b   :  { %v1197_v18 = vand.u32 4294901760, %v1196_v1 }
 0x11d   :  { %1122 = vmatpush.xpose.msra.mxu1 %v958_v19  ;;  %1163 = vmatpush.xpose.msra.mxu2 %v1162_v46  ;;  %v1198_v48 = vsub.f32 %v1196_v1, %v1197_v18 }
 0x11f   :  { %v1199_v3 = vand.u32 4294901760, %v1198_v48 }
 0x121   :  { %1200 = vmatpush.xpose.msra.mxu3 %v1199_v3 }
 0x125   :  { %1206 = vmatpush.xpose.msra.mxu3 %v1205_v12 }
 0x170   :  { %v930_v15 = vpop.permute.xlu0 %929 }
 0x171   :  { %v934_v49 = vsel %vm933_vm0, %v930_v15, 0 }
 0x172   :  { %v960_v11 = vand.u32 4294901760, %v934_v49 }
 0x174   :  { %v961_v6 = vsub.f32 %v934_v49, %v960_v11  ;;  %1004 = vmatmul.f32.vlgmr.msrb.gmra.mxu1 %v960_v11 }
 0x175   :  { %1262 = vmatpush.xpose.msrb.mxu1 %v1160_v50 }
 0x176   :  { %v962_v59 = vand.u32 4294901760, %v961_v6  ;;  %1034 = vmatmul.f32.vlgmr.msrb.gmra.mxu2 %v961_v6 }
 0x177   :  { %1295 = vmatpush.xpose.msrb.mxu2 %v1197_v18 }
 0x178   :  { %v963_v19 = vsub.f32 %v961_v6, %v962_v59  ;;  %v932_v63 = vpop.permute.xlu0 %931  ;;  %1064 = vmatmul.f32.vlgmr.msrb.gmra.mxu3 %v962_v59 }
 0x179   :  { %v936_v4 = vsel %vm933_vm0, %v932_v63, 0  ;;  %1264 = vmatpush.xpose.msrb.mxu1 %v1162_v46  ;;  %1324 = vmatpush.xpose.msrb.mxu3 %v1160_v50 }
 0x17a   :  { %v964_v53 = vand.u32 4294901760, %v963_v19  ;;  %v968_v25 = vand.u32 4294901760, %v936_v4 }
 0x17b   :  { %1299 = vmatpush.xpose.msrb.mxu2 %v1203_v14 }
 0x17c   :  { %v969_v17 = vsub.f32 %v936_v4, %v968_v25  ;;  %965 = vmatmul.f32.vlgmr.msrb.gmra.mxu0 %v964_v53  ;;  %1008 = vmatmul.f32.gmra.mxu1 %v968_v25 }
 0x17d   :  { %1232 = vmatpush.xpose.msrb.mxu0 %v1196_v1  ;;  %1326 = vmatpush.xpose.msrb.mxu3 %v1162_v46  ;;  %v3225_v46 = vld [vmem:[#allocation10_spill] sm:$0xff] }
 0x17e   :  { %1039 = vmatmul.f32.gmra.mxu2 %v969_v17  ;;  %v970_v27 = vand.u32 4294901760, %v969_v17 }
 0x180   :  { %v1135_v58 = vpop.permute.xlu1 %1134  ;;  %1070 = vmatmul.f32.gmra.mxu3 %v970_v27  ;;  %v971_v5 = vsub.f32 %v969_v17, %v970_v27 }
 0x181   :  { %v1138_v33 = vsel %vm933_vm0, %v1135_v58, 0  ;;  %1235 = vmatpush.xpose.msrb.mxu0 %v1202_v57  ;;  %v922_v57 = vld [vmem:[%s3123_s2] sm:$0xff] }
 0x182   :  { %v1164_v47 = vand.u32 4294901760, %v1138_v33  ;;  %v972_v32 = vand.u32 4294901760, %v971_v5 }
 0x184   :  { %v1165_v37 = vsub.f32 %v1138_v33, %v1164_v47  ;;  %973 = vmatmul.f32.gmra.mxu0 %v972_v32  ;;  %1124 = vmatmul.f32.vlgmr.msra.gmra.mxu1 %v960_v11 }
 0x185   :  { %1461 = vmatpush.msra.mxu1 %v3221_v36 }
 0x186   :  { %v1166_v56 = vand.u32 4294901760, %v1165_v37 }
 0x187   :  { %1467 = vmatpush.msra.mxu1 %v3222_v41 }
 0x188   :  { %v1167_v0 = vsub.f32 %v1165_v37, %v1166_v56  ;;  %v1137_v61 = vpop.permute.xlu1 %1136  ;;  %1208 = vmatmul.f32.vlgmr.msra.gmra.mxu3 %v1164_v47 }
 0x189   :  { %v1140_v43 = vsel %vm933_vm0, %v1137_v61, 0  ;;  %1523 = vmatpush.msra.mxu3 %v2460_v55 }
 0x18a   :  { %v1168_v16 = vand.u32 4294901760, %v1167_v0  ;;  %v1172_v51 = vand.u32 4294901760, %v1140_v43 }
 0x18b   :  { %1525 = vmatpush.msra.mxu3 %v2404_v2 }
 0x18c   :  { %v1173_v26 = vsub.f32 %v1140_v43, %v1172_v51  ;;  %1097 = vmatmul.f32.vlgmr.msra.gmra.mxu0 %v960_v11  ;;  %1128 = vmatmul.f32.gmra.mxu1 %v968_v25 }
 0x18d   :  { %1169 = vmatmul.f32.vlgmr.msra.gmra.mxu2 %v1168_v16  ;;  %1422 = vmatpush.msra.mxu0 %v2460_v55 }
 0x18e   :  { %v1174_v7 = vand.u32 4294901760, %v1173_v26  ;;  %1493 = vmatpush.msra.mxu2 %v3223_v28 }
 0x18f   :  { %1424 = vmatpush.msra.mxu0 %v2404_v2 }
 0x190   :  { %1212 = vmatmul.f32.gmra.mxu3 %v1172_v51  ;;  %v1175_v31 = vsub.f32 %v1173_v26, %v1174_v7  ;;  %1496 = vmatpush.msra.mxu2 %v3224_v39 }
 0x192   :  { %v1176_v9 = vand.u32 4294901760, %v1175_v31 }
 0x194   :  { %1101 = vmatmul.f32.gmra.mxu0 %v968_v25  ;;  %1268 = vmatmul.f32.vlgmr.msrb.gmra.mxu1 %v1166_v56 }
 0x195   :  { %1177 = vmatmul.f32.gmra.mxu2 %v1176_v9  ;;  %1585 = vmatpush.msrb.mxu1 %v2460_v55 }
 0x197   :  { %1587 = vmatpush.msrb.mxu1 %v2404_v2 }
 0x198   :  { %1328 = vmatmul.f32.vlgmr.msrb.gmra.mxu3 %v1164_v47 }
 0x199   :  { %1651 = vmatpush.msrb.mxu3 %v2860_v60 }
 0x19b   :  { %1657 = vmatpush.msrb.mxu3 %v2827_v42 }
 0x19c   :  { %1238 = vmatmul.f32.vlgmr.msrb.gmra.mxu0 %v1165_v37  ;;  %1274 = vmatmul.f32.gmra.mxu1 %v1174_v7 }
 0x19d   :  { %1301 = vmatmul.f32.vlgmr.msrb.gmra.mxu2 %v1164_v47  ;;  %1556 = vmatpush.msrb.mxu0 %v3225_v46 }
 0x19e   :  { %1612 = vmatpush.msrb.mxu2 %v2801_v40 }
 0x19f   :  { %1560 = vmatpush.msrb.mxu0 %v3226_v45 }
 0x1a0   :  { %1332 = vmatmul.f32.gmra.mxu3 %v1172_v51  ;;  %1614 = vmatpush.msrb.mxu2 %v2751_v52 }
 0x1a4   :  { %1243 = vmatmul.f32.gmra.mxu0 %v1173_v26  ;;  %v2193_v26 = vld [vmem:[%s3123_s2 + $0x10] sm:$0xff] }
 0x1a5   :  { %1305 = vmatmul.f32.gmra.mxu2 %v1172_v51 }
 0x1f1   :  { %v1005_v2 = vpop.f32.mrf.mxu1 }
 0x1f9   :  { %v966_v55 = vpop.f32.mrf.mxu0  ;;  %v1009_v60 = vpop.f32.mrf.mxu1 }
 0x1fa   :  { %v1035_v20 = vpop.f32.mrf.mxu2  ;;  %v967_v14 = vadd.f32 %v966_v55, %v922_v57 }
 0x1fb   :  { %v1065_v13 = vpop.f32.mrf.mxu3 }
 0x1fc   :  { %v1006_v3 = vadd.f32 %v1005_v2, %v967_v14 }
 0x1fe   :  { %v1036_v11 = vadd.f32 %v1035_v20, %v1006_v3 }
 0x200   :  { %v1066_v63 = vadd.f32 %v1065_v13, %v1036_v11 }
 0x201   :  { %v974_v42 = vpop.f32.mrf.mxu0  ;;  %v1125_v1 = vpop.f32.mrf.mxu1 }
 0x202   :  { %v1040_v50 = vpop.f32.mrf.mxu2  ;;  %v975_v6 = vadd.f32 %v974_v42, %v923_v54 }
 0x203   :  { %v1071_v35 = vpop.f32.mrf.mxu3 }
 0x204   :  { %v1010_v4 = vadd.f32 %v1009_v60, %v975_v6 }
 0x206   :  { %v1041_v58 = vadd.f32 %v1040_v50, %v1010_v4 }
 0x208   :  { %v1072_v37 = vadd.f32 %v1071_v35, %v1041_v58  ;;  %v2194_v35 = vld [vmem:[%s3123_s2 + $0x18] sm:$0xff] }
 0x209   :  { %v1098_v18 = vpop.f32.mrf.mxu0  ;;  %v1129_v49 = vpop.f32.mrf.mxu1 }
 0x20a   :  { %v1099_v25 = vadd.f32 %v1098_v18, %v1066_v63 }
 0x20b   :  { %v1209_v48 = vpop.f32.mrf.mxu3 }
 0x20c   :  { %v1126_v47 = vadd.f32 %v1125_v1, %v1099_v25 }
 0x20e   :  { %v1336_v0 = vmax.f32 %v1126_v47, 0.0 }
 0x210   :  { %v1170_v12 = vpop.f32.mrf.mxu2  ;;  %v1340_v31 = vmul.f32 %v2193_v26, %v1336_v0 }
 0x211   :  { %v1102_v15 = vpop.f32.mrf.mxu0  ;;  %v1171_v59 = vadd.f32 %v1170_v12, %v922_v57  ;;  %v1269_v33 = vpop.f32.mrf.mxu1 }
 0x212   :  { %v1103_v61 = vadd.f32 %v1102_v15, %v1072_v37  ;;  %v1345_v13 = vsel %vm1344_vm1, %v1340_v31, -inf }
 0x213   :  { %v1213_v19 = vpop.f32.mrf.mxu3  ;;  %v1210_v17 = vadd.f32 %v1209_v48, %v1171_v59 }
 0x214   :  { %v1130_v39 = vadd.f32 %v1129_v49, %v1103_v61 }
 0x216   :  { %v1337_v60 = vmax.f32 %v1130_v39, 0.0 }
 0x218   :  { %v1178_v53 = vpop.f32.mrf.mxu2  ;;  %v1341_v48 = vmul.f32 %v2194_v35, %v1337_v60 }
 0x219   :  { %v1239_v27 = vpop.f32.mrf.mxu0  ;;  %v1179_v32 = vadd.f32 %v1178_v53, %v923_v54  ;;  %v1275_v46 = vpop.f32.mrf.mxu1 }
 0x21a   :  { %v1240_v5 = vadd.f32 %v1239_v27, %v1210_v17  ;;  %v1348_v49 = vsel %vm1344_vm1, %v1341_v48, -inf }
 0x21b   :  { %v1329_v56 = vpop.f32.mrf.mxu3  ;;  %v1214_v16 = vadd.f32 %v1213_v19, %v1179_v32 }
 0x21c   :  { %v1270_v36 = vadd.f32 %v1269_v33, %v1240_v5 }
 0x220   :  { %v1302_v41 = vpop.f32.mrf.mxu2 }
 0x221   :  { %v1303_v43 = vadd.f32 %v1302_v41, %v1270_v36  ;;  %v1244_v51 = vpop.f32.mrf.mxu0 }
 0x222   :  { %v1245_v28 = vadd.f32 %v1244_v51, %v1214_v16 }
 0x223   :  { %v1330_v7 = vadd.f32 %v1329_v56, %v1303_v43  ;;  %v1333_v50 = vpop.f32.mrf.mxu3 }
 0x224   :  { %v1276_v2 = vadd.f32 %v1275_v46, %v1245_v28 }
 0x225   :  { %v1338_v9 = vmax.f32 %v1330_v7, 0.0 }
 0x227   :  { %v1342_v45 = vmul.f32 %v2193_v26, %v1338_v9 }
 0x228   :  { %v1306_v55 = vpop.f32.mrf.mxu2 }
 0x229   :  { %v1346_v20 = vsel %vm1344_vm1, %v1342_v45, -inf  ;;  %v1307_v42 = vadd.f32 %v1306_v55, %v1276_v2 }
 0x22a   :  { %v1347_v57 = vmax.f32 %v1345_v13, %v1346_v20 }
 0x22b   :  { %v1334_v1 = vadd.f32 %v1333_v50, %v1307_v42 }
 0x22c   :  { %v1351_v18 = vsub.f32 %v1340_v31, %v1347_v57  ;;  %v1353_v14 = vsub.f32 %v1342_v45, %v1347_v57 }
 0x22d   :  { %v1339_v3 = vmax.f32 %v1334_v1, 0.0 }
 0x22e   :  { %v1355_v54 = vmul.f32 1.442695, %v1351_v18  ;;  %v1359_v12 = vmul.f32 1.442695, %v1353_v14 }
 0x22f   :  { %v1343_v15 = vmul.f32 %v2194_v35, %v1339_v3 }
 0x230   :  { %2196 = vpow2.f32 %v1355_v54 }
 0x231   :  { %2198 = vpow2.f32 %v1359_v12  ;;  %v1349_v11 = vsel %vm1344_vm1, %v1343_v15, -inf }
 0x232   :  { %v1350_v6 = vmax.f32 %v1348_v49, %v1349_v11  ;;  %v3230_v49 = vld [vmem:[#allocation12_spill] sm:$0xff] }
 0x234   :  { %v1352_v59 = vsub.f32 %v1341_v48, %v1350_v6  ;;  %v1354_v19 = vsub.f32 %v1343_v15, %v1350_v6 }
 0x236   :  { %v2197_v63 = vpop.eup %2196  ;;  %v1357_v4 = vmul.f32 1.442695, %v1352_v59  ;;  %v1361_v53 = vmul.f32 1.442695, %v1354_v19  ;;  %v3231_v59 = vld [vmem:[#allocation15_spill] sm:$0xff]  ;;  %v3232_v19 = vld [vmem:[#allocation2_spill] sm:$0xff] }
 0x237   :  { %v3025_v25 = vpop.eup %2198  ;;  %v1363_v17 = vsel %vm1344_vm1, %v2197_v63, 0.0 }
 0x238   :  { %v1364_v27 = vsel %vm1344_vm1, %v3025_v25, 0.0  ;;  %2200 = vpow2.f32 %v1357_v4 }
 0x239   :  { %v1365_v58 = vadd.f32 %v1364_v27, %v1363_v17  ;;  %2202 = vpow2.f32 %v1361_v53  ;;  %v3233_v53 = vld [vmem:[#allocation4_spill] sm:$0xff]  ;;  %v3234_v17 = vld [vmem:[#allocation7_spill] sm:$0xff] }
 0x23b   :  { %2204 = vrcp.f32 %v1365_v58  ;;  %v1380_v0 = vand.u32 2147483648, %v1365_v58  ;;  %v1378_v43 = vand.u32 2147483647, %v1365_v58  ;;  %vm1374_vm3 = vweird.f32 %v1365_v58 }
 0x23d   :  { %v1381_v26 = vor.u32 1.1754944e-38, %v1380_v0  ;;  %vm1379_vm5 = vcmp.eq.f32.partialorder %v1378_v43, 8.507059e+37 }
 0x23e   :  { %v2201_v5 = vpop.eup %2200 }
 0x23f   :  { %v3030_v33 = vpop.eup %2202  ;;  %v1366_v47 = vsel %vm1344_vm1, %v2201_v5, 0.0 }
 0x240   :  { %v1367_v32 = vsel %vm1344_vm1, %v3030_v33, 0.0 }
 0x241   :  { %v2205_v37 = vpop.eup %2204  ;;  %v1368_v36 = vadd.f32 %v1367_v32, %v1366_v47 }
 0x242   :  { %v1370_v56 = vmul.f32 %v2205_v37, %v1365_v58  ;;  %vm1375_vm2 = vweird.f32 %v2205_v37 }
 0x243   :  { %2206 = vrcp.f32 %v1368_v36  ;;  %vm1376_vm4 = vmor %vm1374_vm3, %vm1375_vm2  ;;  %v1394_v46 = vand.u32 2147483648, %v1368_v36  ;;  %v1392_v55 = vand.u32 2147483647, %v1368_v36  ;;  %vm1388_vm7 = vweird.f32 %v1368_v36 }
 0x244   :  { %v1371_v41 = vsub.f32 1.0, %v1370_v56 }
 0x245   :  { %v1395_v20 = vor.u32 1.1754944e-38, %v1394_v46  ;;  %vm1393_vm9 = vcmp.eq.f32.partialorder %v1392_v55, 8.507059e+37 }
 0x246   :  { %v1372_v61 = vmul.f32 %v2205_v37, %v1371_v41 }
 0x248   :  { %v1373_v16 = vadd.f32 %v2205_v37, %v1372_v61 }
 0x249   :  { %v2207_v51 = vpop.eup %2206 }
 0x24a   :  { %v1377_v7 = vsel %vm1376_vm4, %v2205_v37, %v1373_v16  ;;  %v1384_v28 = vmul.f32 %v2207_v51, %v1368_v36  ;;  %vm1389_vm6 = vweird.f32 %v2207_v51 }
 0x24b   :  { %v1382_v31 = vsel %vm1379_vm5, %v1381_v26, %v1377_v7  ;;  %vm1390_vm8 = vmor %vm1388_vm7, %vm1389_vm6 }
 0x24c   :  { %v1397_v39 = vmul.f32 %v2197_v63, %v1382_v31  ;;  %v1385_v9 = vsub.f32 1.0, %v1384_v28 }
 0x24e   :  { %v1402_v45 = vsel %vm1344_vm1, %v1397_v39, 0  ;;  %v1386_v2 = vmul.f32 %v2207_v51, %v1385_v9  ;;  %v2208_v39 = vld [vmem:[%s3122_s0] sm:$0xff] }
 0x24f   :  { %v1425_v13 = vand.u32 4294901760, %v1402_v45 }
 0x250   :  { %v1387_v60 = vadd.f32 %v2207_v51, %v1386_v2 }
 0x251   :  { %1469 = vmatmul.f32.vlgmr.msra.gmra.mxu1 %v1425_v13  ;;  %v1426_v42 = vsub.f32 %v1402_v45, %v1425_v13 }
 0x252   :  { %v1391_v35 = vsel %vm1390_vm8, %v2207_v51, %v1387_v60  ;;  %1713 = vmatpush.msra.mxu1 %v2801_v40 }
 0x253   :  { %v1396_v57 = vsel %vm1393_vm9, %v1395_v20, %v1391_v35  ;;  %1499 = vmatmul.f32.vlgmr.msra.gmra.mxu2 %v1426_v42  ;;  %v1427_v50 = vand.u32 4294901760, %v1426_v42 }
 0x254   :  { %v1398_v1 = vmul.f32 %v2201_v5, %v1396_v57  ;;  %1746 = vmatpush.msra.mxu2 %v2835_v8  ;;  %1715 = vmatpush.msra.mxu1 %v2751_v52 }
 0x255   :  { %1529 = vmatmul.f32.vlgmr.msra.gmra.mxu3 %v1427_v50  ;;  %v1428_v18 = vsub.f32 %v1426_v42, %v1427_v50 }
 0x256   :  { %v1405_v14 = vsel %vm1344_vm1, %v1398_v1, 0  ;;  %1775 = vmatpush.msra.mxu3 %v2801_v40  ;;  %1750 = vmatpush.msra.mxu2 %v2795_v10  ;;  %v3228_v10 = vld [vmem:[#allocation8_spill] sm:$0xff] }
 0x257   :  { %v1433_v48 = vand.u32 4294901760, %v1405_v14  ;;  %v1429_v3 = vand.u32 4294901760, %v1428_v18 }
 0x258   :  { %1777 = vmatpush.msra.mxu3 %v2751_v52  ;;  %v3227_v52 = vld [vmem:[#allocation13_spill] sm:$0xff] }
 0x259   :  { %1430 = vmatmul.f32.vlgmr.msra.gmra.mxu0 %v1429_v3  ;;  %1473 = vmatmul.f32.gmra.mxu1 %v1433_v48  ;;  %v1434_v54 = vsub.f32 %v1405_v14, %v1433_v48 }
 0x25a   :  { %1683 = vmatpush.msra.mxu0 %v2819_v23 }
 0x25b   :  { %1504 = vmatmul.f32.gmra.mxu2 %v1434_v54  ;;  %v1435_v8 = vand.u32 4294901760, %v1434_v54 }
 0x25c   :  { %1686 = vmatpush.msra.mxu0 %v2772_v21  ;;  %v1400_v21 = vmul.f32 %v3030_v33, %v1396_v57 }
 0x25d   :  { %1535 = vmatmul.f32.gmra.mxu3 %v1435_v8  ;;  %v1436_v12 = vsub.f32 %v1434_v54, %v1435_v8 }
 0x25e   :  { %v1791_v23 = vsel %vm1344_vm1, %v1400_v21, 0 }
 0x25f   :  { %v1437_v15 = vand.u32 4294901760, %v1436_v12 }
 0x261   :  { %1438 = vmatmul.f32.gmra.mxu0 %v1437_v15  ;;  %1589 = vmatmul.f32.vlgmr.msrb.gmra.mxu1 %v1425_v13 }
 0x262   :  { %1847 = vmatpush.msrb.mxu1 %v2755_v22  ;;  %v1399_v22 = vmul.f32 %v3025_v25, %v1382_v31 }
 0x263   :  { %1620 = vmatmul.f32.vlgmr.msrb.gmra.mxu2 %v1429_v3 }
 0x264   :  { %1879 = vmatpush.msrb.mxu2 %v2661_v44  ;;  %1853 = vmatpush.msrb.mxu1 %v3227_v52  ;;  %v1788_v44 = vsel %vm1344_vm1, %v1399_v22, 0  ;;  %v2210_v22 = vld [vmem:[%s3122_s0 + $0x8] sm:$0xff] }
 0x265   :  { %1659 = vmatmul.f32.vlgmr.msrb.gmra.mxu3 %v1425_v13 }
 0x266   :  { %1909 = vmatpush.msrb.mxu3 %v2630_v30  ;;  %1882 = vmatpush.msrb.mxu2 %v2579_v38  ;;  %v1811_v38 = vand.u32 4294901760, %v1788_v44 }
 0x268   :  { %1911 = vmatpush.msrb.mxu3 %v2548_v24  ;;  %v1812_v40 = vsub.f32 %v1788_v44, %v1811_v38 }
 0x269   :  { %1562 = vmatmul.f32.vlgmr.msrb.gmra.mxu0 %v1425_v13  ;;  %1593 = vmatmul.f32.gmra.mxu1 %v1433_v48 }
 0x26a   :  { %1808 = vmatpush.msrb.mxu0 %v2630_v30 }
 0x26b   :  { %1628 = vmatmul.f32.gmra.mxu2 %v1437_v15 }
 0x26c   :  { %1810 = vmatpush.msrb.mxu0 %v2548_v24 }
 0x26d   :  { %1663 = vmatmul.f32.gmra.mxu3 %v1433_v48 }
 0x271   :  { %1566 = vmatmul.f32.gmra.mxu0 %v1433_v48  ;;  %1719 = vmatmul.f32.vlgmr.msra.gmra.mxu1 %v1427_v50 }
 0x272   :  { %1971 = vmatpush.msra.mxu1 %v2630_v30  ;;  %v3229_v30 = vld [vmem:[#allocation14_spill] sm:$0xff] }
 0x273   :  { %1752 = vmatmul.f32.vlgmr.msra.gmra.mxu2 %v1425_v13 }
 0x274   :  { %1998 = vmatpush.msra.mxu2 %v2878_v34  ;;  %1973 = vmatpush.msra.mxu1 %v2548_v24  ;;  %v1819_v24 = vand.u32 4294901760, %v1791_v23 }
 0x275   :  { %1779 = vmatmul.f32.vlgmr.msra.gmra.mxu3 %v1425_v13 }
 0x276   :  { %2037 = vmatpush.msra.mxu3 %v2930_v62  ;;  %2000 = vmatpush.msra.mxu2 %v2840_v29  ;;  %v1813_v62 = vand.u32 4294901760, %v1812_v40  ;;  %v1820_v6 = vsub.f32 %v1791_v23, %v1819_v24 }
 0x278   :  { %2043 = vmatpush.msra.mxu3 %v3228_v10  ;;  %v1814_v11 = vsub.f32 %v1812_v40, %v1813_v62  ;;  %v1821_v4 = vand.u32 4294901760, %v1820_v6 }
 0x279   :  { %1689 = vmatmul.f32.vlgmr.msra.gmra.mxu0 %v1426_v42  ;;  %1725 = vmatmul.f32.gmra.mxu1 %v1435_v8  ;;  %v2209_v42 = vld [vmem:[%s3122_s0 + $0x10] sm:$0xff] }
 0x27a   :  { %1942 = vmatpush.msra.mxu0 %v3229_v30  ;;  %v1815_v63 = vand.u32 4294901760, %v1814_v11  ;;  %v1822_v25 = vsub.f32 %v1820_v6, %v1821_v4 }
 0x27b   :  { %1756 = vmatmul.f32.gmra.mxu2 %v1433_v48 }
 0x27c   :  { %1946 = vmatpush.msra.mxu0 %v3230_v49  ;;  %v1823_v27 = vand.u32 4294901760, %v1822_v25 }
 0x27d   :  { %1783 = vmatmul.f32.gmra.mxu3 %v1433_v48 }
 0x281   :  { %1694 = vmatmul.f32.gmra.mxu0 %v1434_v54  ;;  %1855 = vmatmul.f32.vlgmr.msrb.gmra.mxu1 %v1811_v38 }
 0x282   :  { %2099 = vmatpush.msrb.mxu1 %v2878_v34 }
 0x283   :  { %1885 = vmatmul.f32.vlgmr.msrb.gmra.mxu2 %v1812_v40 }
 0x284   :  { %2132 = vmatpush.msrb.mxu2 %v3231_v59  ;;  %2101 = vmatpush.msrb.mxu1 %v2840_v29 }
 0x285   :  { %1915 = vmatmul.f32.vlgmr.msrb.gmra.mxu3 %v1813_v62 }
 0x286   :  { %2161 = vmatpush.msrb.mxu3 %v2878_v34  ;;  %2136 = vmatpush.msrb.mxu2 %v3232_v19 }
 0x288   :  { %2163 = vmatpush.msrb.mxu3 %v2840_v29 }
 0x289   :  { %1816 = vmatmul.f32.vlgmr.msrb.gmra.mxu0 %v1815_v63  ;;  %1859 = vmatmul.f32.gmra.mxu1 %v1819_v24 }
 0x28a   :  { %2069 = vmatpush.msrb.mxu0 %v3233_v53 }
 0x28b   :  { %1890 = vmatmul.f32.gmra.mxu2 %v1820_v6 }
 0x28c   :  { %2072 = vmatpush.msrb.mxu0 %v3234_v17 }
 0x28d   :  { %1921 = vmatmul.f32.gmra.mxu3 %v1821_v4 }
 0x291   :  { %1824 = vmatmul.f32.gmra.mxu0 %v1823_v27  ;;  %1975 = vmatmul.f32.vlgmr.msra.gmra.mxu1 %v1811_v38 }
 0x293   :  { %2006 = vmatmul.f32.vlgmr.msra.gmra.mxu2 %v1815_v63 }
 0x295   :  { %2045 = vmatmul.f32.vlgmr.msra.gmra.mxu3 %v1811_v38 }
 0x299   :  { %1948 = vmatmul.f32.vlgmr.msra.gmra.mxu0 %v1811_v38  ;;  %1979 = vmatmul.f32.gmra.mxu1 %v1819_v24 }
 0x29b   :  { %2014 = vmatmul.f32.gmra.mxu2 %v1823_v27 }
 0x29d   :  { %2049 = vmatmul.f32.gmra.mxu3 %v1819_v24 }
 0x2a1   :  { %1952 = vmatmul.f32.gmra.mxu0 %v1819_v24  ;;  %2105 = vmatmul.f32.vlgmr.msrb.gmra.mxu1 %v1813_v62 }
 0x2a3   :  { %2138 = vmatmul.f32.vlgmr.msrb.gmra.mxu2 %v1811_v38 }
 0x2a5   :  { %2165 = vmatmul.f32.vlgmr.msrb.gmra.mxu3 %v1811_v38 }
 0x2a9   :  { %2075 = vmatmul.f32.vlgmr.msrb.gmra.mxu0 %v1812_v40  ;;  %2111 = vmatmul.f32.gmra.mxu1 %v1821_v4 }
 0x2ab   :  { %2142 = vmatmul.f32.gmra.mxu2 %v1819_v24 }
 0x2ad   :  { %2169 = vmatmul.f32.gmra.mxu3 %v1819_v24  ;;  %v2211_v24 = vld [vmem:[%s3122_s0 + $0x18] sm:$0xff] }
 0x2b1   :  { %2080 = vmatmul.f32.gmra.mxu0 %v1820_v6 }
 0x2ce   :  { %v1470_v29 = vpop.f32.mrf.mxu1 }
 0x2d6   :  { %v1431_v34 = vpop.f32.mrf.mxu0  ;;  %v1474_v58 = vpop.f32.mrf.mxu1 }
 0x2d7   :  { %v1500_v5 = vpop.f32.mrf.mxu2  ;;  %v1471_v47 = vadd.f32 %v1470_v29, %v1431_v34 }
 0x2d8   :  { %v1530_v33 = vpop.f32.mrf.mxu3 }
 0x2d9   :  { %v1501_v41 = vadd.f32 %v1500_v5, %v1471_v47 }
 0x2db   :  { %v1531_v0 = vadd.f32 %v1530_v33, %v1501_v41 }
 0x2de   :  { %v1439_v32 = vpop.f32.mrf.mxu0  ;;  %v1590_v37 = vpop.f32.mrf.mxu1 }
 0x2df   :  { %v1505_v36 = vpop.f32.mrf.mxu2  ;;  %v1475_v61 = vadd.f32 %v1474_v58, %v1439_v32 }
 0x2e0   :  { %v1536_v56 = vpop.f32.mrf.mxu3 }
 0x2e1   :  { %v1506_v28 = vadd.f32 %v1505_v36, %v1475_v61 }
 0x2e3   :  { %v1537_v46 = vadd.f32 %v1536_v56, %v1506_v28 }
 0x2e6   :  { %v1563_v43 = vpop.f32.mrf.mxu0  ;;  %v1594_v16 = vpop.f32.mrf.mxu1 }
 0x2e7   :  { %v1564_v51 = vadd.f32 %v1563_v43, %v1531_v0  ;;  %v1621_v26 = vpop.f32.mrf.mxu2 }
 0x2e8   :  { %v1660_v7 = vpop.f32.mrf.mxu3 }
 0x2e9   :  { %v1591_v31 = vadd.f32 %v1590_v37, %v1564_v51  ;;  %v1661_v57 = vadd.f32 %v1660_v7, %v1621_v26  ;;  %v2212_v37 = vld [vmem:[%s3122_s0 + $0x20] sm:$0xff]  ;;  %v2213_v26 = vld [vmem:[%s3122_s0 + $0x30] sm:$0xff] }
 0x2eb   :  { %v2173_v9 = vadd.f32 %v2208_v39, %v1591_v31 }
 0x2ed   :  { %2181 = vst [vmem:[%s3124_s3] sm:$0xff] %v2173_v9 }
 0x2ee   :  { %v1567_v45 = vpop.f32.mrf.mxu0  ;;  %v1720_v2 = vpop.f32.mrf.mxu1 }
 0x2ef   :  { %v1568_v55 = vadd.f32 %v1567_v45, %v1537_v46  ;;  %v1629_v13 = vpop.f32.mrf.mxu2 }
 0x2f0   :  { %v1664_v60 = vpop.f32.mrf.mxu3 }
 0x2f1   :  { %v1595_v20 = vadd.f32 %v1594_v16, %v1568_v55  ;;  %v1665_v8 = vadd.f32 %v1664_v60, %v1629_v13 }
 0x2f3   :  { %v2175_v35 = vadd.f32 %v2209_v42, %v1595_v20  ;;  %v2214_v42 = vld [vmem:[%s3122_s0 + $0x28] sm:$0xff] }
 0x2f5   :  { %2183 = vst [vmem:[%s3124_s3 + $0x10] sm:$0xff] %v2175_v35 }
 0x2f6   :  { %v1690_v50 = vpop.f32.mrf.mxu0  ;;  %v1726_v1 = vpop.f32.mrf.mxu1 }
 0x2f7   :  { %v1691_v18 = vadd.f32 %v1690_v50, %v1661_v57  ;;  %v1753_v14 = vpop.f32.mrf.mxu2 }
 0x2f8   :  { %v1780_v48 = vpop.f32.mrf.mxu3 }
 0x2f9   :  { %v1721_v3 = vadd.f32 %v1720_v2, %v1691_v18 }
 0x2fb   :  { %v1754_v54 = vadd.f32 %v1753_v14, %v1721_v3 }
 0x2fd   :  { %v1781_v12 = vadd.f32 %v1780_v48, %v1754_v54  ;;  %v2215_v54 = vld [vmem:[%s3122_s0 + $0x38] sm:$0xff] }
 0x2fe   :  { %v1695_v15 = vpop.f32.mrf.mxu0  ;;  %v1856_v52 = vpop.f32.mrf.mxu1 }
 0x2ff   :  { %v2174_v44 = vadd.f32 %v2210_v22, %v1781_v12  ;;  %v1696_v38 = vadd.f32 %v1695_v15, %v1665_v8  ;;  %v1757_v21 = vpop.f32.mrf.mxu2 }
 0x300   :  { %v1784_v10 = vpop.f32.mrf.mxu3 }
 0x301   :  { %2182 = vst [vmem:[%s3124_s3 + $0x8] sm:$0xff] %v2174_v44  ;;  %v1727_v30 = vadd.f32 %v1726_v1, %v1696_v38 }
 0x303   :  { %v1758_v40 = vadd.f32 %v1757_v21, %v1727_v30 }
 0x305   :  { %v1785_v23 = vadd.f32 %v1784_v10, %v1758_v40 }
 0x306   :  { %v1817_v49 = vpop.f32.mrf.mxu0  ;;  %v1860_v6 = vpop.f32.mrf.mxu1 }
 0x307   :  { %v2176_v62 = vadd.f32 %v2211_v24, %v1785_v23  ;;  %v1886_v11 = vpop.f32.mrf.mxu2  ;;  %v1857_v19 = vadd.f32 %v1856_v52, %v1817_v49 }
 0x308   :  { %v1916_v59 = vpop.f32.mrf.mxu3 }
 0x309   :  { %2184 = vst [vmem:[%s3124_s3 + $0x18] sm:$0xff] %v2176_v62  ;;  %v1887_v25 = vadd.f32 %v1886_v11, %v1857_v19 }
 0x30b   :  { %v1917_v27 = vadd.f32 %v1916_v59, %v1887_v25 }
 0x30e   :  { %v1825_v63 = vpop.f32.mrf.mxu0  ;;  %v1976_v17 = vpop.f32.mrf.mxu1 }
 0x30f   :  { %v1891_v4 = vpop.f32.mrf.mxu2  ;;  %v1861_v29 = vadd.f32 %v1860_v6, %v1825_v63 }
 0x310   :  { %v1922_v53 = vpop.f32.mrf.mxu3 }
 0x311   :  { %v1892_v47 = vadd.f32 %v1891_v4, %v1861_v29 }
 0x313   :  { %v1923_v41 = vadd.f32 %v1922_v53, %v1892_v47 }
 0x316   :  { %v1949_v34 = vpop.f32.mrf.mxu0  ;;  %v1980_v56 = vpop.f32.mrf.mxu1 }
 0x317   :  { %v1950_v58 = vadd.f32 %v1949_v34, %v1917_v27  ;;  %v2007_v5 = vpop.f32.mrf.mxu2 }
 0x318   :  { %v2046_v33 = vpop.f32.mrf.mxu3 }
 0x319   :  { %v1977_v32 = vadd.f32 %v1976_v17, %v1950_v58  ;;  %v2047_v28 = vadd.f32 %v2046_v33, %v2007_v5 }
 0x31b   :  { %v2177_v36 = vadd.f32 %v2212_v37, %v1977_v32 }
 0x31d   :  { %2185 = vst [vmem:[%s3124_s3 + $0x20] sm:$0xff] %v2177_v36 }
 0x31e   :  { %v1953_v0 = vpop.f32.mrf.mxu0  ;;  %v2106_v31 = vpop.f32.mrf.mxu1 }
 0x31f   :  { %v1954_v61 = vadd.f32 %v1953_v0, %v1923_v41  ;;  %v2015_v43 = vpop.f32.mrf.mxu2 }
 0x320   :  { %v2050_v16 = vpop.f32.mrf.mxu3 }
 0x321   :  { %v1981_v51 = vadd.f32 %v1980_v56, %v1954_v61  ;;  %v2051_v13 = vadd.f32 %v2050_v16, %v2015_v43 }
 0x323   :  { %v2179_v7 = vadd.f32 %v2213_v26, %v1981_v51 }
 0x325   :  { %2187 = vst [vmem:[%s3124_s3 + $0x30] sm:$0xff] %v2179_v7 }
 0x326   :  { %v2076_v39 = vpop.f32.mrf.mxu0  ;;  %v2112_v50 = vpop.f32.mrf.mxu1 }
 0x327   :  { %v2077_v9 = vadd.f32 %v2076_v39, %v2047_v28  ;;  %v2139_v46 = vpop.f32.mrf.mxu2 }
 0x328   :  { %v2166_v2 = vpop.f32.mrf.mxu3 }
 0x329   :  { %v2107_v45 = vadd.f32 %v2106_v31, %v2077_v9 }
 0x32b   :  { %v2140_v55 = vadd.f32 %v2139_v46, %v2107_v45 }
 0x32d   :  { %v2167_v60 = vadd.f32 %v2166_v2, %v2140_v55 }
 0x32e   :  { %v2081_v20 = vpop.f32.mrf.mxu0 }
 0x32f   :  { %v2178_v35 = vadd.f32 %v2214_v42, %v2167_v60  ;;  %v2082_v57 = vadd.f32 %v2081_v20, %v2051_v13  ;;  %v2143_v18 = vpop.f32.mrf.mxu2 }
 0x330   :  { %v2170_v48 = vpop.f32.mrf.mxu3 }
 0x331   :  { %2186 = vst [vmem:[%s3124_s3 + $0x28] sm:$0xff] %v2178_v35  ;;  %v2113_v1 = vadd.f32 %v2112_v50, %v2082_v57 }
 0x333   :  { %v2144_v14 = vadd.f32 %v2143_v18, %v2113_v1 }
 0x335   :  { %v2171_v3 = vadd.f32 %v2170_v48, %v2144_v14 }
 0x337   :  { %v2180_v8 = vadd.f32 %v2215_v54, %v2171_v3 }
 0x339   :  { %2188 = vst [vmem:[%s3124_s3 + $0x38] sm:$0xff] %v2180_v8 }

</bundles_post_ra>
